<compile_context>
chip_gen: v7x
topology: tpu7x:2x2x1
jax: 0.10.0
libtpu: 0.0.40
codegen_flags: <defaults>
</compile_context>

<pallas_src>
import math
from functools import partial

import jax
import jax.numpy as jnp
from jax.experimental import pallas as pl
from jax.experimental.pallas import tpu as pltpu

# bf16 operands feed the MXU at native rate (f32 accumulation retained).
# Set to None for f32 operands (closer bit-parity with the PyTorch reference).
MATMUL_COMPUTE_DTYPE = jnp.bfloat16


# ----------------------------------------------------------------------------
# helpers
# ----------------------------------------------------------------------------
def _round_up(x, m):
    return (x + m - 1) // m * m


def _pick_tile(dim, align, max_tile):
    """Pick a tile (multiple of `align`, <= max_tile) and the padded dim it divides."""
    padded = _round_up(dim, align)
    if padded <= max_tile:
        return padded, padded
    t = (max_tile // align) * align
    while padded % t:
        t -= align
    return t, padded


# ----------------------------------------------------------------------------
# Tiled matmul + bias (+ optional fused GELU and fused residual add)
# ----------------------------------------------------------------------------
def _matmul_bias_kernel(x_ref, w_ref, b_ref, *rest, activation, has_residual):
    if has_residual:
        r_ref, o_ref, acc_ref = rest
    else:
        r_ref = None
        o_ref, acc_ref = rest

    @pl.when(pl.program_id(2) == 0)
    def _():
        acc_ref[...] = jnp.zeros_like(acc_ref)

    acc_ref[...] += jnp.dot(x_ref[...], w_ref[...],
                            preferred_element_type=jnp.float32)

    @pl.when(pl.program_id(2) == pl.num_programs(2) - 1)
    def _():
        y = acc_ref[...] + b_ref[...].astype(jnp.float32)
        if activation == "gelu":
            # TODO(synk): PyTorch nn.GELU default is erf-exact; tanh approximation used here.
            y = jax.nn.gelu(y, approximate=True)
        if has_residual:
            y = y + r_ref[...].astype(jnp.float32)
        o_ref[...] = y.astype(o_ref.dtype)


def matmul_bias(x, w, b, activation=None, residual=None, out_dtype=None,
                *, max_tm=256, max_tn=512, max_tk=None):
    """y = act(x @ w + b) [+ residual].  x:(M,K)  w:(K,N)  b:(N,)  residual:(M,N)"""
    M, K = x.shape
    Kw, N = w.shape
    assert K == Kw
    if out_dtype is None:
        out_dtype = x.dtype

    compute_dtype = MATMUL_COMPUTE_DTYPE or x.dtype
    if max_tk is None:
        # bf16 halves operand bytes -> bigger K tiles still fit v5e's 16 MiB
        # scoped-VMEM default and v7x's 64 MiB physical VMEM when double-buffered.
        max_tk = 2048 if jnp.dtype(compute_dtype).itemsize <= 2 else 1024

    tm, Mp = _pick_tile(M, 8, max_tm)      # divisor-aware: avoids padded rows
    tk, Kp = _pick_tile(K, 128, max_tk)
    tn, Np = _pick_tile(N, 128, max_tn)

    if (Mp, Kp) != (M, K):
        x = jnp.pad(x, ((0, Mp - M), (0, Kp - K)))
    if (Kp, Np) != (K, N):
        w = jnp.pad(w, ((0, Kp - K), (0, Np - N)))
    if Np != N:
        b = jnp.pad(b, (0, Np - N))

    x = x.astype(compute_dtype)
    w = w.astype(compute_dtype)
    b2 = b.reshape(1, Np).astype(jnp.float32)

    operands = [x, w, b2]
    in_specs = [
        pl.BlockSpec((tm, tk), lambda i, j, k: (i, k)),
        pl.BlockSpec((tk, tn), lambda i, j, k: (k, j)),
        pl.BlockSpec((1, tn), lambda i, j, k: (0, j)),
    ]
    has_residual = residual is not None
    if has_residual:
        assert residual.shape == (M, N)
        r = residual
        if (Mp, Np) != (M, N):
            r = jnp.pad(r, ((0, Mp - M), (0, Np - N)))
        operands.append(r)
        in_specs.append(pl.BlockSpec((tm, tn), lambda i, j, k: (i, j)))

    grid = (Mp // tm, Np // tn, Kp // tk)

    out = pl.pallas_call(
        partial(_matmul_bias_kernel, activation=activation,
                has_residual=has_residual),
        out_shape=jax.ShapeDtypeStruct((Mp, Np), out_dtype),
        grid=grid,
        in_specs=in_specs,
        out_specs=pl.BlockSpec((tm, tn), lambda i, j, k: (i, j)),
        scratch_shapes=[pltpu.VMEM((tm, tn), jnp.float32)],
        compiler_params=pltpu.CompilerParams(
            dimension_semantics=("parallel", "parallel", "arbitrary")),
    )(*operands)

    if (Mp, Np) != (M, N):
        out = out[:M, :N]
    return out


# ----------------------------------------------------------------------------
# Row-tiled LayerNorm (f32 math regardless of storage dtype)
# ----------------------------------------------------------------------------
def _layernorm_kernel(x_ref, g_ref, b_ref, o_ref, *, eps):
    x = x_ref[...].astype(jnp.float32)
    mean = jnp.mean(x, axis=-1, keepdims=True)
    var = jnp.mean(jnp.square(x - mean), axis=-1, keepdims=True)
    y = (x - mean) * jax.lax.rsqrt(var + eps)
    o_ref[...] = (y * g_ref[...] + b_ref[...]).astype(o_ref.dtype)


def layernorm(x, gamma, beta, eps=1e-5, *, max_tm=512):
    """Row-wise LayerNorm over the last dim.  x:(M,D)  gamma/beta:(D,)"""
    M, D = x.shape
    tm, Mp = _pick_tile(M, 8, max_tm)
    if Mp != M:
        x = jnp.pad(x, ((0, Mp - M), (0, 0)))

    out = pl.pallas_call(
        partial(_layernorm_kernel, eps=eps),
        out_shape=jax.ShapeDtypeStruct((Mp, D), x.dtype),
        grid=(Mp // tm,),
        in_specs=[
            pl.BlockSpec((tm, D), lambda i: (i, 0)),
            pl.BlockSpec((1, D), lambda i: (0, 0)),
            pl.BlockSpec((1, D), lambda i: (0, 0)),
        ],
        out_specs=pl.BlockSpec((tm, D), lambda i: (i, 0)),
        compiler_params=pltpu.CompilerParams(dimension_semantics=("parallel",)),
    )(x, gamma.reshape(1, D).astype(jnp.float32),
      beta.reshape(1, D).astype(jnp.float32))

    return out[:M] if Mp != M else out


# ----------------------------------------------------------------------------
# Multi-head attention straight from the fused QKV activation.
#   qkv: (B, S, 3D) with columns [Q_h0..Q_hH | K_h0..K_hH | V_h0..V_hH]
#   out: (B, S, D)  -- already in the layout the Wo projection wants.
# One image per grid step; per-head Q/K/V column slices are taken inside VMEM,
# so no HBM transpose/reshape passes are needed around this kernel.
# ----------------------------------------------------------------------------
def _attention_kernel(qkv_ref, o_ref, *, heads, dh, scale):
    D = heads * dh
    outs = []
    for h in range(heads):                       # unrolled at trace time
        q = qkv_ref[:, h * dh:(h + 1) * dh] * scale        # scale Q (SxDh), not scores (SxS)
        k = qkv_ref[:, D + h * dh:D + (h + 1) * dh]
        v = qkv_ref[:, 2 * D + h * dh:2 * D + (h + 1) * dh]
        s = jnp.einsum("qd,kd->qk", q, k,
                       preferred_element_type=jnp.float32)  # f32 scores
        s = s - jnp.max(s, axis=-1, keepdims=True)
        p = jnp.exp(s)
        # EUP reciprocal (separate issue slot); approx error ~1ulp-level.
        p = p * pl.reciprocal(jnp.sum(p, axis=-1, keepdims=True), approx=True)
        o = jnp.dot(p.astype(v.dtype), v,
                    preferred_element_type=jnp.float32)     # P.V in compute dtype
        outs.append(o)
    # Single lane-dense full-block store.
    o_ref[...] = jnp.concatenate(outs, axis=-1).astype(o_ref.dtype)


def attention(qkv, *, heads):
    """softmax(Q K^T / sqrt(Dh)) V per head.  qkv: (B, S, 3D) -> (B, S, D)."""
    B, S, threeD = qkv.shape
    D = threeD // 3
    dh = D // heads
    assert heads * dh == D and 3 * D == threeD
    scale = 1.0 / math.sqrt(dh)

    return pl.pallas_call(
        partial(_attention_kernel, heads=heads, dh=dh, scale=scale),
        out_shape=jax.ShapeDtypeStruct((B, S, D), qkv.dtype),
        grid=(B,),
        in_specs=[pl.BlockSpec((None, S, threeD), lambda b: (b, 0, 0))],
        out_specs=pl.BlockSpec((None, S, D), lambda b: (b, 0, 0)),
        compiler_params=pltpu.CompilerParams(dimension_semantics=("parallel",)),
    )(qkv)


# ----------------------------------------------------------------------------
# ViT forward pass (pre-norm encoder blocks, as in the 2020 ViT paper)
# ----------------------------------------------------------------------------
def vit_forward(x, params, *, patch, heads):
    B, C, H, W = x.shape
    P = patch
    Hp, Wp = H // P, W // P
    n_patches = Hp * Wp
    D = params["cls_token"].shape[-1]
    compute_dtype = MATMUL_COMPUTE_DTYPE or x.dtype

    # --- PatchEmbedding: Conv2d(C, D, kernel=P, stride=P) as a matmul -------
    xp = x.reshape(B, C, Hp, P, Wp, P).transpose(0, 2, 4, 1, 3, 5)
    xp = xp.reshape(B * n_patches, C * P * P)
    tok = matmul_bias(xp, params["pe_w"], params["pe_b"],
                      out_dtype=jnp.float32).reshape(B, n_patches, D)

    cls = jnp.broadcast_to(params["cls_token"], (B, 1, D))
    x_seq = (jnp.concatenate([cls, tok], axis=1)
             + params["pos_embed"]).astype(compute_dtype)
    S = n_patches + 1
    x2d = x_seq.reshape(B * S, D)

    for layer in params["layers"]:
        # multi-head self-attention sub-block (fused QKV projection)
        h = layernorm(x2d, layer["ln1_g"], layer["ln1_b"])
        qkv = matmul_bias(h, layer["w_qkv"], layer["b_qkv"])          # (B*S, 3D)
        o = attention(qkv.reshape(B, S, 3 * D), heads=heads)          # (B, S, D)
        # output projection with the residual add fused into the epilogue
        x2d = matmul_bias(o.reshape(B * S, D), layer["wo"], layer["bo"],
                          residual=x2d)

        # MLP sub-block (GELU fused into the first matmul, residual into the second)
        h2 = layernorm(x2d, layer["ln2_g"], layer["ln2_b"])
        m = matmul_bias(h2, layer["w1"], layer["b1"], activation="gelu")
        x2d = matmul_bias(m, layer["w2"], layer["b2"], residual=x2d)

    # --- classification head on the CLS token -------------------------------
    cls_out = x2d.reshape(B, S, D)[:, 0, :]
    logits = matmul_bias(cls_out, params["head_w"], params["head_b"],
                         out_dtype=jnp.float32)
    return logits


# ----------------------------------------------------------------------------
# Deterministic parameter initialization (shapes implied by the module)
# ----------------------------------------------------------------------------
def init_params(key, *, C, P, D, depth, mlp_dim, n_classes, n_tokens):
    keys = iter(jax.random.split(key, 8 + depth * 8))

    def nrm(shape, scale=0.02):
        return scale * jax.random.normal(next(keys), shape, jnp.float32)

    params = {
        "pe_w": nrm((C * P * P, D)),
        "pe_b": jnp.zeros((D,), jnp.float32),
        "cls_token": nrm((1, 1, D)),
        "pos_embed": nrm((1, n_tokens, D)),
        "head_w": nrm((D, n_classes)),
        "head_b": jnp.zeros((n_classes,), jnp.float32),
        "layers": [],
    }
    for _ in range(depth):
        wq, wk, wv = nrm((D, D)), nrm((D, D)), nrm((D, D))
        params["layers"].append({
            "ln1_g": jnp.ones((D,), jnp.float32),
            "ln1_b": jnp.zeros((D,), jnp.float32),
            # fused QKV projection: [Wq | Wk | Wv] along the output features
            "w_qkv": jnp.concatenate([wq, wk, wv], axis=1),
            "b_qkv": jnp.zeros((3 * D,), jnp.float32),
            "wo": nrm((D, D)), "bo": jnp.zeros((D,), jnp.float32),
            "ln2_g": jnp.ones((D,), jnp.float32),
            "ln2_b": jnp.zeros((D,), jnp.float32),
            "w1": nrm((D, mlp_dim)), "b1": jnp.zeros((mlp_dim,), jnp.float32),
            "w2": nrm((mlp_dim, D)), "b2": jnp.zeros((D,), jnp.float32),
        })
    return params


if __name__ == "__main__":
    B, C, H, W = 2, 4, 16, 16
    P, D, heads, depth, mlp_dim, n_classes = 4, 32, 4, 2, 64, 10
    n_tokens = (H // P) * (W // P) + 1

    key = jax.random.PRNGKey(0)
    kx, kp = jax.random.split(key)
    x = jax.random.normal(kx, (B, C, H, W), jnp.float32)
    params = init_params(kp, C=C, P=P, D=D, depth=depth,
                         mlp_dim=mlp_dim, n_classes=n_classes, n_tokens=n_tokens)

    fwd = jax.jit(partial(vit_forward, patch=P, heads=heads))
    logits = fwd(x, params)
    jax.block_until_ready(logits)
    assert logits.shape == (B, n_classes), logits.shape
    assert bool(jnp.all(jnp.isfinite(logits)))
    print("KERNEL_OK")
</pallas_src>

<mosaic_0001>
module attributes {stable_mosaic.version = 11 : i64} {
  func.func @_matmul_bias_kernel(%arg0: i32, %arg1: i32, %arg2: i32, %arg3: memref<32x128xbf16, #tpu.memory_space<vmem>>, %arg4: memref<128x128xbf16, #tpu.memory_space<vmem>>, %arg5: memref<1x128xf32, #tpu.memory_space<vmem>>, %arg6: memref<32x128xf32, #tpu.memory_space<vmem>>, %arg7: memref<32x128xf32, #tpu.memory_space<vmem>>) attributes {dimension_semantics = [#tpu.dimension_semantics<parallel>, #tpu.dimension_semantics<parallel>, #tpu.dimension_semantics<arbitrary>], iteration_bounds = array<i64: 1, 1, 1>, scalar_prefetch = 0 : i64, scratch_operands = 1 : i64, tpu.core_type = #tpu.core_type<tc>, window_params = [{transform_indices = @transform_0, window_bounds = array<i64: 32, 128>}, {transform_indices = @transform_1, window_bounds = array<i64: 128, 128>}, {transform_indices = @transform_2, window_bounds = array<i64: 1, 128>}, {transform_indices = @transform_3, window_bounds = array<i64: 32, 128>}]} {
    %c0_i32 = arith.constant 0 : i32
    %0 = arith.cmpi eq, %arg2, %c0_i32 : i32
    %1 = arith.extui %0 : i1 to i32
    %c0_i32_0 = arith.constant 0 : i32
    %2 = arith.cmpi ne, %1, %c0_i32_0 : i32
    scf.if %2 {
      %cst_10 = arith.constant 0.000000e+00 : f32
      %12 = vector.broadcast %cst_10 : f32 to vector<32x128xf32>
      %c0_11 = arith.constant 0 : index
      %c0_12 = arith.constant 0 : index
      %13 = vector.load %arg7[%c0_11, %c0_12] : memref<32x128xf32, #tpu.memory_space<vmem>>, vector<32x128xf32>
      tpu.vector_store %arg7[%c0_11, %c0_12], %12 {strides = array<i32>} : memref<32x128xf32, #tpu.memory_space<vmem>>, vector<32x128xf32>,
    } else {
    }
    %c0 = arith.constant 0 : index
    %c0_1 = arith.constant 0 : index
    %3 = vector.load %arg7[%c0, %c0_1] : memref<32x128xf32, #tpu.memory_space<vmem>>, vector<32x128xf32>
    %c0_2 = arith.constant 0 : index
    %c0_3 = arith.constant 0 : index
    %4 = vector.load %arg3[%c0_2, %c0_3] : memref<32x128xbf16, #tpu.memory_space<vmem>>, vector<32x128xbf16>
    %c0_4 = arith.constant 0 : index
    %c0_5 = arith.constant 0 : index
    %5 = vector.load %arg4[%c0_4, %c0_5] : memref<128x128xbf16, #tpu.memory_space<vmem>>, vector<128x128xbf16>
    %cst = arith.constant dense<0.000000e+00> : vector<32x128xf32>
    %6 = tpu.matmul %4, %5, %cst {dimension_numbers = #tpu.dot_dimension_numbers<[1], [0], [0], [1], [0, 0, 1, 1], [], []>} : vector<32x128xbf16>, vector<128x128xbf16>, vector<32x128xf32> -> vector<32x128xf32>
    %7 = arith.addf %3, %6 : vector<32x128xf32>
    %c0_6 = arith.constant 0 : index
    %c0_7 = arith.constant 0 : index
    %8 = vector.load %arg7[%c0_6, %c0_7] : memref<32x128xf32, #tpu.memory_space<vmem>>, vector<32x128xf32>
    tpu.vector_store %arg7[%c0_6, %c0_7], %7 {strides = array<i32>} : memref<32x128xf32, #tpu.memory_space<vmem>>, vector<32x128xf32>,
    %c0_i32_8 = arith.constant 0 : i32
    %9 = arith.cmpi eq, %arg2, %c0_i32_8 : i32
    %10 = arith.extui %9 : i1 to i32
    %c0_i32_9 = arith.constant 0 : i32
    %11 = arith.cmpi ne, %10, %c0_i32_9 : i32
    scf.if %11 {
      %c0_10 = arith.constant 0 : index
      %c0_11 = arith.constant 0 : index
      %12 = vector.load %arg7[%c0_10, %c0_11] : memref<32x128xf32, #tpu.memory_space<vmem>>, vector<32x128xf32>
      %c0_12 = arith.constant 0 : index
      %c0_13 = arith.constant 0 : index
      %13 = vector.load %arg5[%c0_12, %c0_13] : memref<1x128xf32, #tpu.memory_space<vmem>>, vector<1x128xf32>
      %14 = vector.broadcast %13 : vector<1x128xf32> to vector<32x128xf32>
      %15 = arith.addf %12, %14 : vector<32x128xf32>
      %c0_14 = arith.constant 0 : index
      %c0_15 = arith.constant 0 : index
      %16 = vector.load %arg6[%c0_14, %c0_15] : memref<32x128xf32, #tpu.memory_space<vmem>>, vector<32x128xf32>
      tpu.vector_store %arg6[%c0_14, %c0_15], %15 {strides = array<i32>} : memref<32x128xf32, #tpu.memory_space<vmem>>, vector<32x128xf32>,
    } else {
    }
    return
  }
  func.func @transform_0(%arg0: i32, %arg1: i32, %arg2: i32) -> (i32, i32) {
    %c0_i32 = arith.constant 0 : i32
    return %arg0, %arg2 : i32, i32
  }
  func.func @transform_1(%arg0: i32, %arg1: i32, %arg2: i32) -> (i32, i32) {
    %c0_i32 = arith.constant 0 : i32
    return %arg2, %arg1 : i32, i32
  }
  func.func @transform_2(%arg0: i32, %arg1: i32, %arg2: i32) -> (i32, i32) {
    %c0_i32 = arith.constant 0 : i32
    %c0_i32_0 = arith.constant 0 : i32
    return %c0_i32, %arg1 : i32, i32
  }
  func.func @transform_3(%arg0: i32, %arg1: i32, %arg2: i32) -> (i32, i32) {
    %c0_i32 = arith.constant 0 : i32
    return %arg0, %arg1 : i32, i32
  }
}

module attributes {stable_mosaic.version = 11 : i64} {
  func.func @_layernorm_kernel(%arg0: i32, %arg1: memref<40x32xbf16, #tpu.memory_space<vmem>>, %arg2: memref<1x32xf32, #tpu.memory_space<vmem>>, %arg3: memref<1x32xf32, #tpu.memory_space<vmem>>, %arg4: memref<40x32xbf16, #tpu.memory_space<vmem>>) attributes {dimension_semantics = [#tpu.dimension_semantics<parallel>], iteration_bounds = array<i64: 1>, scalar_prefetch = 0 : i64, scratch_operands = 0 : i64, tpu.core_type = #tpu.core_type<tc>, window_params = [{transform_indices = @transform_0, window_bounds = array<i64: 40, 32>}, {pipeline_mode = #tpu.pipeline_mode<synchronous>, transform_indices = @transform_1, window_bounds = array<i64: 1, 32>}, {pipeline_mode = #tpu.pipeline_mode<synchronous>, transform_indices = @transform_2, window_bounds = array<i64: 1, 32>}, {transform_indices = @transform_3, window_bounds = array<i64: 40, 32>}]} {
    %c0 = arith.constant 0 : index
    %c0_0 = arith.constant 0 : index
    %0 = vector.load %arg1[%c0, %c0_0] : memref<40x32xbf16, #tpu.memory_space<vmem>>, vector<40x32xbf16>
    %1 = arith.extf %0 : vector<40x32xbf16> to vector<40x32xf32>
    %cst = arith.constant dense<0.000000e+00> : vector<40xf32>
    %2 = vector.multi_reduction <add>, %1, %cst [1] : vector<40x32xf32> to vector<40xf32>
    %3 = vector.shape_cast %2 : vector<40xf32> to vector<40x1xf32>
    %cst_1 = arith.constant 3.200000e+01 : f32
    %4 = vector.broadcast %cst_1 : f32 to vector<40x1xf32>
    %5 = arith.divf %3, %4 : vector<40x1xf32>
    %6 = vector.broadcast %5 : vector<40x1xf32> to vector<40x32xf32>
    %7 = arith.subf %1, %6 : vector<40x32xf32>
    %8 = arith.mulf %7, %7 : vector<40x32xf32>
    %cst_2 = arith.constant dense<0.000000e+00> : vector<40xf32>
    %9 = vector.multi_reduction <add>, %8, %cst_2 [1] : vector<40x32xf32> to vector<40xf32>
    %10 = vector.shape_cast %9 : vector<40xf32> to vector<40x1xf32>
    %cst_3 = arith.constant 3.200000e+01 : f32
    %11 = vector.broadcast %cst_3 : f32 to vector<40x1xf32>
    %12 = arith.divf %10, %11 : vector<40x1xf32>
    %13 = vector.broadcast %5 : vector<40x1xf32> to vector<40x32xf32>
    %14 = arith.subf %1, %13 : vector<40x32xf32>
    %cst_4 = arith.constant 9.99999974E-6 : f32
    %15 = vector.broadcast %cst_4 : f32 to vector<40x1xf32>
    %16 = arith.addf %12, %15 : vector<40x1xf32>
    %17 = math.rsqrt %16 : vector<40x1xf32>
    %18 = vector.broadcast %17 : vector<40x1xf32> to vector<40x32xf32>
    %19 = arith.mulf %14, %18 : vector<40x32xf32>
    %c0_5 = arith.constant 0 : index
    %c0_6 = arith.constant 0 : index
    %20 = vector.load %arg2[%c0_5, %c0_6] : memref<1x32xf32, #tpu.memory_space<vmem>>, vector<1x32xf32>
    %21 = vector.broadcast %20 : vector<1x32xf32> to vector<40x32xf32>
    %22 = arith.mulf %19, %21 : vector<40x32xf32>
    %c0_7 = arith.constant 0 : index
    %c0_8 = arith.constant 0 : index
    %23 = vector.load %arg3[%c0_7, %c0_8] : memref<1x32xf32, #tpu.memory_space<vmem>>, vector<1x32xf32>
    %24 = vector.broadcast %23 : vector<1x32xf32> to vector<40x32xf32>
    %25 = arith.addf %22, %24 : vector<40x32xf32>
    %26 = arith.truncf %25 : vector<40x32xf32> to vector<40x32xbf16>
    %c0_9 = arith.constant 0 : index
    %c0_10 = arith.constant 0 : index
    %27 = vector.load %arg4[%c0_9, %c0_10] : memref<40x32xbf16, #tpu.memory_space<vmem>>, vector<40x32xbf16>
    tpu.vector_store %arg4[%c0_9, %c0_10], %26 {strides = array<i32>} : memref<40x32xbf16, #tpu.memory_space<vmem>>, vector<40x32xbf16>,
    return
  }
  func.func @transform_0(%arg0: i32) -> (i32, i32) {
    %c0_i32 = arith.constant 0 : i32
    %c0_i32_0 = arith.constant 0 : i32
    return %arg0, %c0_i32 : i32, i32
  }
  func.func @transform_1(%arg0: i32) -> (i32, i32) {
    %c0_i32 = arith.constant 0 : i32
    %c0_i32_0 = arith.constant 0 : i32
    %c0_i32_1 = arith.constant 0 : i32
    return %c0_i32, %c0_i32_0 : i32, i32
  }
  func.func @transform_2(%arg0: i32) -> (i32, i32) {
    %c0_i32 = arith.constant 0 : i32
    %c0_i32_0 = arith.constant 0 : i32
    %c0_i32_1 = arith.constant 0 : i32
    return %c0_i32, %c0_i32_0 : i32, i32
  }
  func.func @transform_3(%arg0: i32) -> (i32, i32) {
    %c0_i32 = arith.constant 0 : i32
    %c0_i32_0 = arith.constant 0 : i32
    return %arg0, %c0_i32 : i32, i32
  }
}

module attributes {stable_mosaic.version = 11 : i64} {
  func.func @_attention_kernel(%arg0: i32, %arg1: memref<1x17x96xbf16, #tpu.memory_space<vmem>>, %arg2: memref<1x17x32xbf16, #tpu.memory_space<vmem>>) attributes {dimension_semantics = [#tpu.dimension_semantics<parallel>], iteration_bounds = array<i64: 2>, scalar_prefetch = 0 : i64, scratch_operands = 0 : i64, tpu.core_type = #tpu.core_type<tc>, window_params = [{transform_indices = @transform_0, window_bounds = array<i64: 1, 17, 96>}, {transform_indices = @transform_1, window_bounds = array<i64: 1, 17, 32>}]} {
    %c0 = arith.constant 0 : index
    %c0_0 = arith.constant 0 : index
    %c0_1 = arith.constant 0 : index
    %0 = vector.load %arg1[%c0, %c0_0, %c0_1] : memref<1x17x96xbf16, #tpu.memory_space<vmem>>, vector<1x17x8xbf16>
    %1 = vector.shape_cast %0 : vector<1x17x8xbf16> to vector<17x8xbf16>
    %cst = arith.constant 3.535160e-01 : bf16
    %2 = vector.broadcast %cst : bf16 to vector<17x8xbf16>
    %3 = arith.mulf %1, %2 : vector<17x8xbf16>
    %c0_2 = arith.constant 0 : index
    %c0_3 = arith.constant 0 : index
    %c32 = arith.constant 32 : index
    %4 = vector.load %arg1[%c0_2, %c0_3, %c32] : memref<1x17x96xbf16, #tpu.memory_space<vmem>>, vector<1x17x8xbf16>
    %5 = vector.shape_cast %4 : vector<1x17x8xbf16> to vector<17x8xbf16>
    %c0_4 = arith.constant 0 : index
    %c0_5 = arith.constant 0 : index
    %c64 = arith.constant 64 : index
    %6 = vector.load %arg1[%c0_4, %c0_5, %c64] : memref<1x17x96xbf16, #tpu.memory_space<vmem>>, vector<1x17x8xbf16>
    %7 = vector.shape_cast %6 : vector<1x17x8xbf16> to vector<17x8xbf16>
    "tpu.trace_start"() <{level = 10 : i32, message = "qd,kd->qk"}> : () -> ()
    %cst_6 = arith.constant dense<0.000000e+00> : vector<17x17xf32>
    %8 = tpu.matmul %3, %5, %cst_6 {dimension_numbers = #tpu.dot_dimension_numbers<[1], [1], [0], [0], [0, 0, 1, 0], [], []>} : vector<17x8xbf16>, vector<17x8xbf16>, vector<17x17xf32> -> vector<17x17xf32>
    "tpu.trace_stop"() : () -> ()
    %cst_7 = arith.constant dense<0xFF800000> : vector<17xf32>
    %9 = vector.multi_reduction <maximumf>, %8, %cst_7 [1] : vector<17x17xf32> to vector<17xf32>
    %10 = vector.shape_cast %9 : vector<17xf32> to vector<17x1xf32>
    %11 = vector.broadcast %10 : vector<17x1xf32> to vector<17x17xf32>
    %12 = arith.subf %8, %11 : vector<17x17xf32>
    %13 = math.exp %12 : vector<17x17xf32>
    %cst_8 = arith.constant dense<0.000000e+00> : vector<17xf32>
    %14 = vector.multi_reduction <add>, %13, %cst_8 [1] : vector<17x17xf32> to vector<17xf32>
    %15 = vector.shape_cast %14 : vector<17xf32> to vector<17x1xf32>
    %16 = tpu.reciprocal %15 {approx = true} : vector<17x1xf32> -> vector<17x1xf32>
    %17 = vector.broadcast %16 : vector<17x1xf32> to vector<17x17xf32>
    %18 = arith.mulf %13, %17 : vector<17x17xf32>
    %19 = arith.truncf %18 : vector<17x17xf32> to vector<17x17xbf16>
    %cst_9 = arith.constant dense<0.000000e+00> : vector<17x8xf32>
    %20 = tpu.matmul %19, %7, %cst_9 {dimension_numbers = #tpu.dot_dimension_numbers<[1], [0], [0], [1], [0, 0, 1, 1], [], []>} : vector<17x17xbf16>, vector<17x8xbf16>, vector<17x8xf32> -> vector<17x8xf32>
    %c0_10 = arith.constant 0 : index
    %c0_11 = arith.constant 0 : index
    %c8 = arith.constant 8 : index
    %21 = vector.load %arg1[%c0_10, %c0_11, %c8] : memref<1x17x96xbf16, #tpu.memory_space<vmem>>, vector<1x17x8xbf16>
    %22 = vector.shape_cast %21 : vector<1x17x8xbf16> to vector<17x8xbf16>
    %cst_12 = arith.constant 3.535160e-01 : bf16
    %23 = vector.broadcast %cst_12 : bf16 to vector<17x8xbf16>
    %24 = arith.mulf %22, %23 : vector<17x8xbf16>
    %c0_13 = arith.constant 0 : index
    %c0_14 = arith.constant 0 : index
    %c40 = arith.constant 40 : index
    %25 = vector.load %arg1[%c0_13, %c0_14, %c40] : memref<1x17x96xbf16, #tpu.memory_space<vmem>>, vector<1x17x8xbf16>
    %26 = vector.shape_cast %25 : vector<1x17x8xbf16> to vector<17x8xbf16>
    %c0_15 = arith.constant 0 : index
    %c0_16 = arith.constant 0 : index
    %c72 = arith.constant 72 : index
    %27 = vector.load %arg1[%c0_15, %c0_16, %c72] : memref<1x17x96xbf16, #tpu.memory_space<vmem>>, vector<1x17x8xbf16>
    %28 = vector.shape_cast %27 : vector<1x17x8xbf16> to vector<17x8xbf16>
    "tpu.trace_start"() <{level = 10 : i32, message = "qd,kd->qk"}> : () -> ()
    %cst_17 = arith.constant dense<0.000000e+00> : vector<17x17xf32>
    %29 = tpu.matmul %24, %26, %cst_17 {dimension_numbers = #tpu.dot_dimension_numbers<[1], [1], [0], [0], [0, 0, 1, 0], [], []>} : vector<17x8xbf16>, vector<17x8xbf16>, vector<17x17xf32> -> vector<17x17xf32>
    "tpu.trace_stop"() : () -> ()
    %cst_18 = arith.constant dense<0xFF800000> : vector<17xf32>
    %30 = vector.multi_reduction <maximumf>, %29, %cst_18 [1] : vector<17x17xf32> to vector<17xf32>
    %31 = vector.shape_cast %30 : vector<17xf32> to vector<17x1xf32>
    %32 = vector.broadcast %31 : vector<17x1xf32> to vector<17x17xf32>
    %33 = arith.subf %29, %32 : vector<17x17xf32>
    %34 = math.exp %33 : vector<17x17xf32>
    %cst_19 = arith.constant dense<0.000000e+00> : vector<17xf32>
    %35 = vector.multi_reduction <add>, %34, %cst_19 [1] : vector<17x17xf32> to vector<17xf32>
    %36 = vector.shape_cast %35 : vector<17xf32> to vector<17x1xf32>
    %37 = tpu.reciprocal %36 {approx = true} : vector<17x1xf32> -> vector<17x1xf32>
    %38 = vector.broadcast %37 : vector<17x1xf32> to vector<17x17xf32>
    %39 = arith.mulf %34, %38 : vector<17x17xf32>
    %40 = arith.truncf %39 : vector<17x17xf32> to vector<17x17xbf16>
    %cst_20 = arith.constant dense<0.000000e+00> : vector<17x8xf32>
    %41 = tpu.matmul %40, %28, %cst_20 {dimension_numbers = #tpu.dot_dimension_numbers<[1], [0], [0], [1], [0, 0, 1, 1], [], []>} : vector<17x17xbf16>, vector<17x8xbf16>, vector<17x8xf32> -> vector<17x8xf32>
    %c0_21 = arith.constant 0 : index
    %c0_22 = arith.constant 0 : index
    %c16 = arith.constant 16 : index
    %42 = vector.load %arg1[%c0_21, %c0_22, %c16] : memref<1x17x96xbf16, #tpu.memory_space<vmem>>, vector<1x17x8xbf16>
    %43 = vector.shape_cast %42 : vector<1x17x8xbf16> to vector<17x8xbf16>
    %cst_23 = arith.constant 3.535160e-01 : bf16
    %44 = vector.broadcast %cst_23 : bf16 to vector<17x8xbf16>
    %45 = arith.mulf %43, %44 : vector<17x8xbf16>
    %c0_24 = arith.constant 0 : index
    %c0_25 = arith.constant 0 : index
    %c48 = arith.constant 48 : index
    %46 = vector.load %arg1[%c0_24, %c0_25, %c48] : memref<1x17x96xbf16, #tpu.memory_space<vmem>>, vector<1x17x8xbf16>
    %47 = vector.shape_cast %46 : vector<1x17x8xbf16> to vector<17x8xbf16>
    %c0_26 = arith.constant 0 : index
    %c0_27 = arith.constant 0 : index
    %c80 = arith.constant 80 : index
    %48 = vector.load %arg1[%c0_26, %c0_27, %c80] : memref<1x17x96xbf16, #tpu.memory_space<vmem>>, vector<1x17x8xbf16>
    %49 = vector.shape_cast %48 : vector<1x17x8xbf16> to vector<17x8xbf16>
    "tpu.trace_start"() <{level = 10 : i32, message = "qd,kd->qk"}> : () -> ()
    %cst_28 = arith.constant dense<0.000000e+00> : vector<17x17xf32>
    %50 = tpu.matmul %45, %47, %cst_28 {dimension_numbers = #tpu.dot_dimension_numbers<[1], [1], [0], [0], [0, 0, 1, 0], [], []>} : vector<17x8xbf16>, vector<17x8xbf16>, vector<17x17xf32> -> vector<17x17xf32>
    "tpu.trace_stop"() : () -> ()
    %cst_29 = arith.constant dense<0xFF800000> : vector<17xf32>
    %51 = vector.multi_reduction <maximumf>, %50, %cst_29 [1] : vector<17x17xf32> to vector<17xf32>
    %52 = vector.shape_cast %51 : vector<17xf32> to vector<17x1xf32>
    %53 = vector.broadcast %52 : vector<17x1xf32> to vector<17x17xf32>
    %54 = arith.subf %50, %53 : vector<17x17xf32>
    %55 = math.exp %54 : vector<17x17xf32>
    %cst_30 = arith.constant dense<0.000000e+00> : vector<17xf32>
    %56 = vector.multi_reduction <add>, %55, %cst_30 [1] : vector<17x17xf32> to vector<17xf32>
    %57 = vector.shape_cast %56 : vector<17xf32> to vector<17x1xf32>
    %58 = tpu.reciprocal %57 {approx = true} : vector<17x1xf32> -> vector<17x1xf32>
    %59 = vector.broadcast %58 : vector<17x1xf32> to vector<17x17xf32>
    %60 = arith.mulf %55, %59 : vector<17x17xf32>
    %61 = arith.truncf %60 : vector<17x17xf32> to vector<17x17xbf16>
    %cst_31 = arith.constant dense<0.000000e+00> : vector<17x8xf32>
    %62 = tpu.matmul %61, %49, %cst_31 {dimension_numbers = #tpu.dot_dimension_numbers<[1], [0], [0], [1], [0, 0, 1, 1], [], []>} : vector<17x17xbf16>, vector<17x8xbf16>, vector<17x8xf32> -> vector<17x8xf32>
    %c0_32 = arith.constant 0 : index
    %c0_33 = arith.constant 0 : index
    %c24 = arith.constant 24 : index
    %63 = vector.load %arg1[%c0_32, %c0_33, %c24] : memref<1x17x96xbf16, #tpu.memory_space<vmem>>, vector<1x17x8xbf16>
    %64 = vector.shape_cast %63 : vector<1x17x8xbf16> to vector<17x8xbf16>
    %cst_34 = arith.constant 3.535160e-01 : bf16
    %65 = vector.broadcast %cst_34 : bf16 to vector<17x8xbf16>
    %66 = arith.mulf %64, %65 : vector<17x8xbf16>
    %c0_35 = arith.constant 0 : index
    %c0_36 = arith.constant 0 : index
    %c56 = arith.constant 56 : index
    %67 = vector.load %arg1[%c0_35, %c0_36, %c56] : memref<1x17x96xbf16, #tpu.memory_space<vmem>>, vector<1x17x8xbf16>
    %68 = vector.shape_cast %67 : vector<1x17x8xbf16> to vector<17x8xbf16>
    %c0_37 = arith.constant 0 : index
    %c0_38 = arith.constant 0 : index
    %c88 = arith.constant 88 : index
    %69 = vector.load %arg1[%c0_37, %c0_38, %c88] : memref<1x17x96xbf16, #tpu.memory_space<vmem>>, vector<1x17x8xbf16>
    %70 = vector.shape_cast %69 : vector<1x17x8xbf16> to vector<17x8xbf16>
    "tpu.trace_start"() <{level = 10 : i32, message = "qd,kd->qk"}> : () -> ()
    %cst_39 = arith.constant dense<0.000000e+00> : vector<17x17xf32>
    %71 = tpu.matmul %66, %68, %cst_39 {dimension_numbers = #tpu.dot_dimension_numbers<[1], [1], [0], [0], [0, 0, 1, 0], [], []>} : vector<17x8xbf16>, vector<17x8xbf16>, vector<17x17xf32> -> vector<17x17xf32>
    "tpu.trace_stop"() : () -> ()
    %cst_40 = arith.constant dense<0xFF800000> : vector<17xf32>
    %72 = vector.multi_reduction <maximumf>, %71, %cst_40 [1] : vector<17x17xf32> to vector<17xf32>
    %73 = vector.shape_cast %72 : vector<17xf32> to vector<17x1xf32>
    %74 = vector.broadcast %73 : vector<17x1xf32> to vector<17x17xf32>
    %75 = arith.subf %71, %74 : vector<17x17xf32>
    %76 = math.exp %75 : vector<17x17xf32>
    %cst_41 = arith.constant dense<0.000000e+00> : vector<17xf32>
    %77 = vector.multi_reduction <add>, %76, %cst_41 [1] : vector<17x17xf32> to vector<17xf32>
    %78 = vector.shape_cast %77 : vector<17xf32> to vector<17x1xf32>
    %79 = tpu.reciprocal %78 {approx = true} : vector<17x1xf32> -> vector<17x1xf32>
    %80 = vector.broadcast %79 : vector<17x1xf32> to vector<17x17xf32>
    %81 = arith.mulf %76, %80 : vector<17x17xf32>
    %82 = arith.truncf %81 : vector<17x17xf32> to vector<17x17xbf16>
    %cst_42 = arith.constant dense<0.000000e+00> : vector<17x8xf32>
    %83 = tpu.matmul %82, %70, %cst_42 {dimension_numbers = #tpu.dot_dimension_numbers<[1], [0], [0], [1], [0, 0, 1, 1], [], []>} : vector<17x17xbf16>, vector<17x8xbf16>, vector<17x8xf32> -> vector<17x8xf32>
    %84 = tpu.concatenate %20, %41, %62, %83 in 1 : vector<17x8xf32>, vector<17x8xf32>, vector<17x8xf32>, vector<17x8xf32> -> vector<17x32xf32>
    %85 = arith.truncf %84 : vector<17x32xf32> to vector<17x32xbf16>
    %c0_43 = arith.constant 0 : index
    %c0_44 = arith.constant 0 : index
    %c0_45 = arith.constant 0 : index
    %86 = vector.load %arg2[%c0_43, %c0_44, %c0_45] : memref<1x17x32xbf16, #tpu.memory_space<vmem>>, vector<1x17x32xbf16>
    %87 = vector.shape_cast %86 : vector<1x17x32xbf16> to vector<17x32xbf16>
    %88 = vector.shape_cast %85 : vector<17x32xbf16> to vector<1x17x32xbf16>
    tpu.vector_store %arg2[%c0_43, %c0_44, %c0_45], %88 {strides = array<i32>} : memref<1x17x32xbf16, #tpu.memory_space<vmem>>, vector<1x17x32xbf16>,
    return
  }
  func.func @transform_0(%arg0: i32) -> (i32, i32, i32) {
    %c0_i32 = arith.constant 0 : i32
    %c0_i32_0 = arith.constant 0 : i32
    %c0_i32_1 = arith.constant 0 : i32
    return %arg0, %c0_i32, %c0_i32_0 : i32, i32, i32
  }
  func.func @transform_1(%arg0: i32) -> (i32, i32, i32) {
    %c0_i32 = arith.constant 0 : i32
    %c0_i32_0 = arith.constant 0 : i32
    %c0_i32_1 = arith.constant 0 : i32
    return %arg0, %c0_i32, %c0_i32_0 : i32, i32, i32
  }
}

module attributes {stable_mosaic.version = 11 : i64} {
  func.func @_matmul_bias_kernel(%arg0: i32, %arg1: i32, %arg2: i32, %arg3: memref<40x128xbf16, #tpu.memory_space<vmem>>, %arg4: memref<128x128xbf16, #tpu.memory_space<vmem>>, %arg5: memref<1x128xf32, #tpu.memory_space<vmem>>, %arg6: memref<40x128xbf16, #tpu.memory_space<vmem>>, %arg7: memref<40x128xf32, #tpu.memory_space<vmem>>) attributes {dimension_semantics = [#tpu.dimension_semantics<parallel>, #tpu.dimension_semantics<parallel>, #tpu.dimension_semantics<arbitrary>], iteration_bounds = array<i64: 1, 1, 1>, scalar_prefetch = 0 : i64, scratch_operands = 1 : i64, tpu.core_type = #tpu.core_type<tc>, window_params = [{transform_indices = @transform_0, window_bounds = array<i64: 40, 128>}, {transform_indices = @transform_1, window_bounds = array<i64: 128, 128>}, {transform_indices = @transform_2, window_bounds = array<i64: 1, 128>}, {transform_indices = @transform_3, window_bounds = array<i64: 40, 128>}]} {
    %c0_i32 = arith.constant 0 : i32
    %0 = arith.cmpi eq, %arg2, %c0_i32 : i32
    %1 = arith.extui %0 : i1 to i32
    %c0_i32_0 = arith.constant 0 : i32
    %2 = arith.cmpi ne, %1, %c0_i32_0 : i32
    scf.if %2 {
      %cst_10 = arith.constant 0.000000e+00 : f32
      %12 = vector.broadcast %cst_10 : f32 to vector<40x128xf32>
      %c0_11 = arith.constant 0 : index
      %c0_12 = arith.constant 0 : index
      %13 = vector.load %arg7[%c0_11, %c0_12] : memref<40x128xf32, #tpu.memory_space<vmem>>, vector<40x128xf32>
      tpu.vector_store %arg7[%c0_11, %c0_12], %12 {strides = array<i32>} : memref<40x128xf32, #tpu.memory_space<vmem>>, vector<40x128xf32>,
    } else {
    }
    %c0 = arith.constant 0 : index
    %c0_1 = arith.constant 0 : index
    %3 = vector.load %arg7[%c0, %c0_1] : memref<40x128xf32, #tpu.memory_space<vmem>>, vector<40x128xf32>
    %c0_2 = arith.constant 0 : index
    %c0_3 = arith.constant 0 : index
    %4 = vector.load %arg3[%c0_2, %c0_3] : memref<40x128xbf16, #tpu.memory_space<vmem>>, vector<40x128xbf16>
    %c0_4 = arith.constant 0 : index
    %c0_5 = arith.constant 0 : index
    %5 = vector.load %arg4[%c0_4, %c0_5] : memref<128x128xbf16, #tpu.memory_space<vmem>>, vector<128x128xbf16>
    %cst = arith.constant dense<0.000000e+00> : vector<40x128xf32>
    %6 = tpu.matmul %4, %5, %cst {dimension_numbers = #tpu.dot_dimension_numbers<[1], [0], [0], [1], [0, 0, 1, 1], [], []>} : vector<40x128xbf16>, vector<128x128xbf16>, vector<40x128xf32> -> vector<40x128xf32>
    %7 = arith.addf %3, %6 : vector<40x128xf32>
    %c0_6 = arith.constant 0 : index
    %c0_7 = arith.constant 0 : index
    %8 = vector.load %arg7[%c0_6, %c0_7] : memref<40x128xf32, #tpu.memory_space<vmem>>, vector<40x128xf32>
    tpu.vector_store %arg7[%c0_6, %c0_7], %7 {strides = array<i32>} : memref<40x128xf32, #tpu.memory_space<vmem>>, vector<40x128xf32>,
    %c0_i32_8 = arith.constant 0 : i32
    %9 = arith.cmpi eq, %arg2, %c0_i32_8 : i32
    %10 = arith.extui %9 : i1 to i32
    %c0_i32_9 = arith.constant 0 : i32
    %11 = arith.cmpi ne, %10, %c0_i32_9 : i32
    scf.if %11 {
      %c0_10 = arith.constant 0 : index
      %c0_11 = arith.constant 0 : index
      %12 = vector.load %arg7[%c0_10, %c0_11] : memref<40x128xf32, #tpu.memory_space<vmem>>, vector<40x128xf32>
      %c0_12 = arith.constant 0 : index
      %c0_13 = arith.constant 0 : index
      %13 = vector.load %arg5[%c0_12, %c0_13] : memref<1x128xf32, #tpu.memory_space<vmem>>, vector<1x128xf32>
      %14 = vector.broadcast %13 : vector<1x128xf32> to vector<40x128xf32>
      %15 = arith.addf %12, %14 : vector<40x128xf32>
      %16 = arith.truncf %15 : vector<40x128xf32> to vector<40x128xbf16>
      %c0_14 = arith.constant 0 : index
      %c0_15 = arith.constant 0 : index
      %17 = vector.load %arg6[%c0_14, %c0_15] : memref<40x128xbf16, #tpu.memory_space<vmem>>, vector<40x128xbf16>
      tpu.vector_store %arg6[%c0_14, %c0_15], %16 {strides = array<i32>} : memref<40x128xbf16, #tpu.memory_space<vmem>>, vector<40x128xbf16>,
    } else {
    }
    return
  }
  func.func @transform_0(%arg0: i32, %arg1: i32, %arg2: i32) -> (i32, i32) {
    %c0_i32 = arith.constant 0 : i32
    return %arg0, %arg2 : i32, i32
  }
  func.func @transform_1(%arg0: i32, %arg1: i32, %arg2: i32) -> (i32, i32) {
    %c0_i32 = arith.constant 0 : i32
    return %arg2, %arg1 : i32, i32
  }
  func.func @transform_2(%arg0: i32, %arg1: i32, %arg2: i32) -> (i32, i32) {
    %c0_i32 = arith.constant 0 : i32
    %c0_i32_0 = arith.constant 0 : i32
    return %c0_i32, %arg1 : i32, i32
  }
  func.func @transform_3(%arg0: i32, %arg1: i32, %arg2: i32) -> (i32, i32) {
    %c0_i32 = arith.constant 0 : i32
    return %arg0, %arg1 : i32, i32
  }
}

module attributes {stable_mosaic.version = 11 : i64} {
  func.func @_matmul_bias_kernel(%arg0: i32, %arg1: i32, %arg2: i32, %arg3: memref<40x128xbf16, #tpu.memory_space<vmem>>, %arg4: memref<128x128xbf16, #tpu.memory_space<vmem>>, %arg5: memref<1x128xf32, #tpu.memory_space<vmem>>, %arg6: memref<40x128xbf16, #tpu.memory_space<vmem>>, %arg7: memref<40x128xf32, #tpu.memory_space<vmem>>) attributes {dimension_semantics = [#tpu.dimension_semantics<parallel>, #tpu.dimension_semantics<parallel>, #tpu.dimension_semantics<arbitrary>], iteration_bounds = array<i64: 1, 1, 1>, scalar_prefetch = 0 : i64, scratch_operands = 1 : i64, tpu.core_type = #tpu.core_type<tc>, window_params = [{transform_indices = @transform_0, window_bounds = array<i64: 40, 128>}, {transform_indices = @transform_1, window_bounds = array<i64: 128, 128>}, {transform_indices = @transform_2, window_bounds = array<i64: 1, 128>}, {transform_indices = @transform_3, window_bounds = array<i64: 40, 128>}]} {
    %c0_i32 = arith.constant 0 : i32
    %0 = arith.cmpi eq, %arg2, %c0_i32 : i32
    %1 = arith.extui %0 : i1 to i32
    %c0_i32_0 = arith.constant 0 : i32
    %2 = arith.cmpi ne, %1, %c0_i32_0 : i32
    scf.if %2 {
      %cst_10 = arith.constant 0.000000e+00 : f32
      %12 = vector.broadcast %cst_10 : f32 to vector<40x128xf32>
      %c0_11 = arith.constant 0 : index
      %c0_12 = arith.constant 0 : index
      %13 = vector.load %arg7[%c0_11, %c0_12] : memref<40x128xf32, #tpu.memory_space<vmem>>, vector<40x128xf32>
      tpu.vector_store %arg7[%c0_11, %c0_12], %12 {strides = array<i32>} : memref<40x128xf32, #tpu.memory_space<vmem>>, vector<40x128xf32>,
    } else {
    }
    %c0 = arith.constant 0 : index
    %c0_1 = arith.constant 0 : index
    %3 = vector.load %arg7[%c0, %c0_1] : memref<40x128xf32, #tpu.memory_space<vmem>>, vector<40x128xf32>
    %c0_2 = arith.constant 0 : index
    %c0_3 = arith.constant 0 : index
    %4 = vector.load %arg3[%c0_2, %c0_3] : memref<40x128xbf16, #tpu.memory_space<vmem>>, vector<40x128xbf16>
    %c0_4 = arith.constant 0 : index
    %c0_5 = arith.constant 0 : index
    %5 = vector.load %arg4[%c0_4, %c0_5] : memref<128x128xbf16, #tpu.memory_space<vmem>>, vector<128x128xbf16>
    %cst = arith.constant dense<0.000000e+00> : vector<40x128xf32>
    %6 = tpu.matmul %4, %5, %cst {dimension_numbers = #tpu.dot_dimension_numbers<[1], [0], [0], [1], [0, 0, 1, 1], [], []>} : vector<40x128xbf16>, vector<128x128xbf16>, vector<40x128xf32> -> vector<40x128xf32>
    %7 = arith.addf %3, %6 : vector<40x128xf32>
    %c0_6 = arith.constant 0 : index
    %c0_7 = arith.constant 0 : index
    %8 = vector.load %arg7[%c0_6, %c0_7] : memref<40x128xf32, #tpu.memory_space<vmem>>, vector<40x128xf32>
    tpu.vector_store %arg7[%c0_6, %c0_7], %7 {strides = array<i32>} : memref<40x128xf32, #tpu.memory_space<vmem>>, vector<40x128xf32>,
    %c0_i32_8 = arith.constant 0 : i32
    %9 = arith.cmpi eq, %arg2, %c0_i32_8 : i32
    %10 = arith.extui %9 : i1 to i32
    %c0_i32_9 = arith.constant 0 : i32
    %11 = arith.cmpi ne, %10, %c0_i32_9 : i32
    scf.if %11 {
      %c0_10 = arith.constant 0 : index
      %c0_11 = arith.constant 0 : index
      %12 = vector.load %arg7[%c0_10, %c0_11] : memref<40x128xf32, #tpu.memory_space<vmem>>, vector<40x128xf32>
      %c0_12 = arith.constant 0 : index
      %c0_13 = arith.constant 0 : index
      %13 = vector.load %arg5[%c0_12, %c0_13] : memref<1x128xf32, #tpu.memory_space<vmem>>, vector<1x128xf32>
      %14 = vector.broadcast %13 : vector<1x128xf32> to vector<40x128xf32>
      %15 = arith.addf %12, %14 : vector<40x128xf32>
      %16 = arith.mulf %15, %15 : vector<40x128xf32>
      %17 = arith.mulf %15, %16 : vector<40x128xf32>
      %cst_14 = arith.constant 4.471500e-02 : f32
      %18 = vector.broadcast %cst_14 : f32 to vector<40x128xf32>
      %19 = arith.mulf %18, %17 : vector<40x128xf32>
      %20 = arith.addf %15, %19 : vector<40x128xf32>
      %cst_15 = arith.constant 0.797884583 : f32
      %21 = vector.broadcast %cst_15 : f32 to vector<40x128xf32>
      %22 = arith.mulf %21, %20 : vector<40x128xf32>
      %23 = math.tanh %22 : vector<40x128xf32>
      %cst_16 = arith.constant 1.000000e+00 : f32
      %24 = vector.broadcast %cst_16 : f32 to vector<40x128xf32>
      %25 = arith.addf %24, %23 : vector<40x128xf32>
      %cst_17 = arith.constant 5.000000e-01 : f32
      %26 = vector.broadcast %cst_17 : f32 to vector<40x128xf32>
      %27 = arith.mulf %26, %25 : vector<40x128xf32>
      %28 = arith.mulf %15, %27 : vector<40x128xf32>
      %29 = arith.truncf %28 : vector<40x128xf32> to vector<40x128xbf16>
      %c0_18 = arith.constant 0 : index
      %c0_19 = arith.constant 0 : index
      %30 = vector.load %arg6[%c0_18, %c0_19] : memref<40x128xbf16, #tpu.memory_space<vmem>>, vector<40x128xbf16>
      tpu.vector_store %arg6[%c0_18, %c0_19], %29 {strides = array<i32>} : memref<40x128xbf16, #tpu.memory_space<vmem>>, vector<40x128xbf16>,
    } else {
    }
    return
  }
  func.func @transform_0(%arg0: i32, %arg1: i32, %arg2: i32) -> (i32, i32) {
    %c0_i32 = arith.constant 0 : i32
    return %arg0, %arg2 : i32, i32
  }
  func.func @transform_1(%arg0: i32, %arg1: i32, %arg2: i32) -> (i32, i32) {
    %c0_i32 = arith.constant 0 : i32
    return %arg2, %arg1 : i32, i32
  }
  func.func @transform_2(%arg0: i32, %arg1: i32, %arg2: i32) -> (i32, i32) {
    %c0_i32 = arith.constant 0 : i32
    %c0_i32_0 = arith.constant 0 : i32
    return %c0_i32, %arg1 : i32, i32
  }
  func.func @transform_3(%arg0: i32, %arg1: i32, %arg2: i32) -> (i32, i32) {
    %c0_i32 = arith.constant 0 : i32
    return %arg0, %arg1 : i32, i32
  }
}

module attributes {stable_mosaic.version = 11 : i64} {
  func.func @_matmul_bias_kernel(%arg0: i32, %arg1: i32, %arg2: i32, %arg3: memref<8x128xbf16, #tpu.memory_space<vmem>>, %arg4: memref<128x128xbf16, #tpu.memory_space<vmem>>, %arg5: memref<1x128xf32, #tpu.memory_space<vmem>>, %arg6: memref<8x128xf32, #tpu.memory_space<vmem>>, %arg7: memref<8x128xf32, #tpu.memory_space<vmem>>) attributes {dimension_semantics = [#tpu.dimension_semantics<parallel>, #tpu.dimension_semantics<parallel>, #tpu.dimension_semantics<arbitrary>], iteration_bounds = array<i64: 1, 1, 1>, scalar_prefetch = 0 : i64, scratch_operands = 1 : i64, tpu.core_type = #tpu.core_type<tc>, window_params = [{transform_indices = @transform_0, window_bounds = array<i64: 8, 128>}, {transform_indices = @transform_1, window_bounds = array<i64: 128, 128>}, {transform_indices = @transform_2, window_bounds = array<i64: 1, 128>}, {transform_indices = @transform_3, window_bounds = array<i64: 8, 128>}]} {
    %c0_i32 = arith.constant 0 : i32
    %0 = arith.cmpi eq, %arg2, %c0_i32 : i32
    %1 = arith.extui %0 : i1 to i32
    %c0_i32_0 = arith.constant 0 : i32
    %2 = arith.cmpi ne, %1, %c0_i32_0 : i32
    scf.if %2 {
      %cst_10 = arith.constant 0.000000e+00 : f32
      %12 = vector.broadcast %cst_10 : f32 to vector<8x128xf32>
      %c0_11 = arith.constant 0 : index
      %c0_12 = arith.constant 0 : index
      %13 = vector.load %arg7[%c0_11, %c0_12] : memref<8x128xf32, #tpu.memory_space<vmem>>, vector<8x128xf32>
      tpu.vector_store %arg7[%c0_11, %c0_12], %12 {strides = array<i32>} : memref<8x128xf32, #tpu.memory_space<vmem>>, vector<8x128xf32>,
    } else {
    }
    %c0 = arith.constant 0 : index
    %c0_1 = arith.constant 0 : index
    %3 = vector.load %arg7[%c0, %c0_1] : memref<8x128xf32, #tpu.memory_space<vmem>>, vector<8x128xf32>
    %c0_2 = arith.constant 0 : index
    %c0_3 = arith.constant 0 : index
    %4 = vector.load %arg3[%c0_2, %c0_3] : memref<8x128xbf16, #tpu.memory_space<vmem>>, vector<8x128xbf16>
    %c0_4 = arith.constant 0 : index
    %c0_5 = arith.constant 0 : index
    %5 = vector.load %arg4[%c0_4, %c0_5] : memref<128x128xbf16, #tpu.memory_space<vmem>>, vector<128x128xbf16>
    %cst = arith.constant dense<0.000000e+00> : vector<8x128xf32>
    %6 = tpu.matmul %4, %5, %cst {dimension_numbers = #tpu.dot_dimension_numbers<[1], [0], [0], [1], [0, 0, 1, 1], [], []>} : vector<8x128xbf16>, vector<128x128xbf16>, vector<8x128xf32> -> vector<8x128xf32>
    %7 = arith.addf %3, %6 : vector<8x128xf32>
    %c0_6 = arith.constant 0 : index
    %c0_7 = arith.constant 0 : index
    %8 = vector.load %arg7[%c0_6, %c0_7] : memref<8x128xf32, #tpu.memory_space<vmem>>, vector<8x128xf32>
    tpu.vector_store %arg7[%c0_6, %c0_7], %7 {strides = array<i32>} : memref<8x128xf32, #tpu.memory_space<vmem>>, vector<8x128xf32>,
    %c0_i32_8 = arith.constant 0 : i32
    %9 = arith.cmpi eq, %arg2, %c0_i32_8 : i32
    %10 = arith.extui %9 : i1 to i32
    %c0_i32_9 = arith.constant 0 : i32
    %11 = arith.cmpi ne, %10, %c0_i32_9 : i32
    scf.if %11 {
      %c0_10 = arith.constant 0 : index
      %c0_11 = arith.constant 0 : index
      %12 = vector.load %arg7[%c0_10, %c0_11] : memref<8x128xf32, #tpu.memory_space<vmem>>, vector<8x128xf32>
      %c0_12 = arith.constant 0 : index
      %c0_13 = arith.constant 0 : index
      %13 = vector.load %arg5[%c0_12, %c0_13] : memref<1x128xf32, #tpu.memory_space<vmem>>, vector<1x128xf32>
      %14 = vector.broadcast %13 : vector<1x128xf32> to vector<8x128xf32>
      %15 = arith.addf %12, %14 : vector<8x128xf32>
      %c0_14 = arith.constant 0 : index
      %c0_15 = arith.constant 0 : index
      %16 = vector.load %arg6[%c0_14, %c0_15] : memref<8x128xf32, #tpu.memory_space<vmem>>, vector<8x128xf32>
      tpu.vector_store %arg6[%c0_14, %c0_15], %15 {strides = array<i32>} : memref<8x128xf32, #tpu.memory_space<vmem>>, vector<8x128xf32>,
    } else {
    }
    return
  }
  func.func @transform_0(%arg0: i32, %arg1: i32, %arg2: i32) -> (i32, i32) {
    %c0_i32 = arith.constant 0 : i32
    return %arg0, %arg2 : i32, i32
  }
  func.func @transform_1(%arg0: i32, %arg1: i32, %arg2: i32) -> (i32, i32) {
    %c0_i32 = arith.constant 0 : i32
    return %arg2, %arg1 : i32, i32
  }
  func.func @transform_2(%arg0: i32, %arg1: i32, %arg2: i32) -> (i32, i32) {
    %c0_i32 = arith.constant 0 : i32
    %c0_i32_0 = arith.constant 0 : i32
    return %c0_i32, %arg1 : i32, i32
  }
  func.func @transform_3(%arg0: i32, %arg1: i32, %arg2: i32) -> (i32, i32) {
    %c0_i32 = arith.constant 0 : i32
    return %arg0, %arg1 : i32, i32
  }
}

module attributes {stable_mosaic.version = 11 : i64} {
  func.func @_matmul_bias_kernel(%arg0: i32, %arg1: i32, %arg2: i32, %arg3: memref<40x128xbf16, #tpu.memory_space<vmem>>, %arg4: memref<128x128xbf16, #tpu.memory_space<vmem>>, %arg5: memref<1x128xf32, #tpu.memory_space<vmem>>, %arg6: memref<40x128xbf16, #tpu.memory_space<vmem>>, %arg7: memref<40x128xbf16, #tpu.memory_space<vmem>>, %arg8: memref<40x128xf32, #tpu.memory_space<vmem>>) attributes {dimension_semantics = [#tpu.dimension_semantics<parallel>, #tpu.dimension_semantics<parallel>, #tpu.dimension_semantics<arbitrary>], iteration_bounds = array<i64: 1, 1, 1>, scalar_prefetch = 0 : i64, scratch_operands = 1 : i64, tpu.core_type = #tpu.core_type<tc>, window_params = [{transform_indices = @transform_0, window_bounds = array<i64: 40, 128>}, {transform_indices = @transform_1, window_bounds = array<i64: 128, 128>}, {transform_indices = @transform_2, window_bounds = array<i64: 1, 128>}, {transform_indices = @transform_3, window_bounds = array<i64: 40, 128>}, {transform_indices = @transform_4, window_bounds = array<i64: 40, 128>}]} {
    %c0_i32 = arith.constant 0 : i32
    %0 = arith.cmpi eq, %arg2, %c0_i32 : i32
    %1 = arith.extui %0 : i1 to i32
    %c0_i32_0 = arith.constant 0 : i32
    %2 = arith.cmpi ne, %1, %c0_i32_0 : i32
    scf.if %2 {
      %cst_10 = arith.constant 0.000000e+00 : f32
      %12 = vector.broadcast %cst_10 : f32 to vector<40x128xf32>
      %c0_11 = arith.constant 0 : index
      %c0_12 = arith.constant 0 : index
      %13 = vector.load %arg8[%c0_11, %c0_12] : memref<40x128xf32, #tpu.memory_space<vmem>>, vector<40x128xf32>
      tpu.vector_store %arg8[%c0_11, %c0_12], %12 {strides = array<i32>} : memref<40x128xf32, #tpu.memory_space<vmem>>, vector<40x128xf32>,
    } else {
    }
    %c0 = arith.constant 0 : index
    %c0_1 = arith.constant 0 : index
    %3 = vector.load %arg8[%c0, %c0_1] : memref<40x128xf32, #tpu.memory_space<vmem>>, vector<40x128xf32>
    %c0_2 = arith.constant 0 : index
    %c0_3 = arith.constant 0 : index
    %4 = vector.load %arg3[%c0_2, %c0_3] : memref<40x128xbf16, #tpu.memory_space<vmem>>, vector<40x128xbf16>
    %c0_4 = arith.constant 0 : index
    %c0_5 = arith.constant 0 : index
    %5 = vector.load %arg4[%c0_4, %c0_5] : memref<128x128xbf16, #tpu.memory_space<vmem>>, vector<128x128xbf16>
    %cst = arith.constant dense<0.000000e+00> : vector<40x128xf32>
    %6 = tpu.matmul %4, %5, %cst {dimension_numbers = #tpu.dot_dimension_numbers<[1], [0], [0], [1], [0, 0, 1, 1], [], []>} : vector<40x128xbf16>, vector<128x128xbf16>, vector<40x128xf32> -> vector<40x128xf32>
    %7 = arith.addf %3, %6 : vector<40x128xf32>
    %c0_6 = arith.constant 0 : index
    %c0_7 = arith.constant 0 : index
    %8 = vector.load %arg8[%c0_6, %c0_7] : memref<40x128xf32, #tpu.memory_space<vmem>>, vector<40x128xf32>
    tpu.vector_store %arg8[%c0_6, %c0_7], %7 {strides = array<i32>} : memref<40x128xf32, #tpu.memory_space<vmem>>, vector<40x128xf32>,
    %c0_i32_8 = arith.constant 0 : i32
    %9 = arith.cmpi eq, %arg2, %c0_i32_8 : i32
    %10 = arith.extui %9 : i1 to i32
    %c0_i32_9 = arith.constant 0 : i32
    %11 = arith.cmpi ne, %10, %c0_i32_9 : i32
    scf.if %11 {
      %c0_10 = arith.constant 0 : index
      %c0_11 = arith.constant 0 : index
      %12 = vector.load %arg8[%c0_10, %c0_11] : memref<40x128xf32, #tpu.memory_space<vmem>>, vector<40x128xf32>
      %c0_12 = arith.constant 0 : index
      %c0_13 = arith.constant 0 : index
      %13 = vector.load %arg5[%c0_12, %c0_13] : memref<1x128xf32, #tpu.memory_space<vmem>>, vector<1x128xf32>
      %14 = vector.broadcast %13 : vector<1x128xf32> to vector<40x128xf32>
      %15 = arith.addf %12, %14 : vector<40x128xf32>
      %c0_14 = arith.constant 0 : index
      %c0_15 = arith.constant 0 : index
      %16 = vector.load %arg6[%c0_14, %c0_15] : memref<40x128xbf16, #tpu.memory_space<vmem>>, vector<40x128xbf16>
      %17 = arith.extf %16 : vector<40x128xbf16> to vector<40x128xf32>
      %18 = arith.addf %15, %17 : vector<40x128xf32>
      %19 = arith.truncf %18 : vector<40x128xf32> to vector<40x128xbf16>
      %c0_16 = arith.constant 0 : index
      %c0_17 = arith.constant 0 : index
      %20 = vector.load %arg7[%c0_16, %c0_17] : memref<40x128xbf16, #tpu.memory_space<vmem>>, vector<40x128xbf16>
      tpu.vector_store %arg7[%c0_16, %c0_17], %19 {strides = array<i32>} : memref<40x128xbf16, #tpu.memory_space<vmem>>, vector<40x128xbf16>,
    } else {
    }
    return
  }
  func.func @transform_0(%arg0: i32, %arg1: i32, %arg2: i32) -> (i32, i32) {
    %c0_i32 = arith.constant 0 : i32
    return %arg0, %arg2 : i32, i32
  }
  func.func @transform_1(%arg0: i32, %arg1: i32, %arg2: i32) -> (i32, i32) {
    %c0_i32 = arith.constant 0 : i32
    return %arg2, %arg1 : i32, i32
  }
  func.func @transform_2(%arg0: i32, %arg1: i32, %arg2: i32) -> (i32, i32) {
    %c0_i32 = arith.constant 0 : i32
    %c0_i32_0 = arith.constant 0 : i32
    return %c0_i32, %arg1 : i32, i32
  }
  func.func @transform_3(%arg0: i32, %arg1: i32, %arg2: i32) -> (i32, i32) {
    %c0_i32 = arith.constant 0 : i32
    return %arg0, %arg1 : i32, i32
  }
  func.func @transform_4(%arg0: i32, %arg1: i32, %arg2: i32) -> (i32, i32) {
    %c0_i32 = arith.constant 0 : i32
    return %arg0, %arg1 : i32, i32
  }
}

</mosaic_0001>

<bundles_post_ra>
// kernel: vit_forward.17
= control target key start
LH: loop header
LB: loop body
LE: loop exit
PB: predicated region body
PF: predicated region fallthrough
CT: control target
= control target key end

     0   :  { %vm24_vm0 = vcmask 261120   ;;  %vm136_vm1 = vcmask 257024   ;;  %s242_s0 = inlined_call_operand.vmem [shape: bf16[40,32], index: 0, kind: input, shape index: {}]   ;;  %s243_s1 = inlined_call_operand.vmem [shape: f32[1,32], index: 1, kind: input, shape index: {}]   ;;  %s244_s2 = inlined_call_operand.vmem [shape: f32[1,32], index: 2, kind: input, shape index: {}]   ;;  %s245_s3 = inlined_call_operand.vmem [shape: bf16[40,32], index: 3, kind: output, shape index: {}]  }
   0x1   :  { %v159_v0 = vld [vmem:[%s242_s0] sm:$0xff]   ;;  %v166_v1 = vld [vmem:[%s242_s0 + $0x8] sm:$0xff]   ;;  %v18_v6 = vld [vmem:[%s242_s0 + $0x10] sm:$0xf] }
   0x2   :  { %v160_v2 = vunpack.c.l.bf16 %v159_v0  ;;  %v164_v3 = vunpack.c.l.bf16 %v166_v1  ;;  %v161_v4 = vunpack.c.h.bf16 %v159_v0  ;;  %v165_v5 = vunpack.c.h.bf16 %v166_v1  ;;  %v146_v54 = vld [vmem:[%s243_s1] ss:$0 sm:$0xff] }
   0x3   :  { %v23_v11 = vunpack.c.l.bf16 %v18_v6  ;;  %v147_v56 = vld [vmem:[%s244_s2] ss:$0 sm:$0xff] }
   0x4   :  { %v25_v7 = vsel %vm24_vm0, %v160_v2, 0.0  ;;  %v31_v8 = vsel %vm24_vm0, %v164_v3, 0.0  ;;  %v28_v9 = vsel %vm24_vm0, %v161_v4, 0.0  ;;  %v34_v10 = vsel %vm24_vm0, %v165_v5, 0.0 }
   0x5   :  { %26 = vadd.xlane.f32.xlu0 %v25_v7  ;;  %32 = vadd.xlane.f32.xlu1 %v31_v8  ;;  %v37_v12 = vsel %vm24_vm0, %v23_v11, 0.0 }
   0x9   :  { %29 = vadd.xlane.f32.xlu0 %v28_v9  ;;  %35 = vadd.xlane.f32.xlu1 %v34_v10 }
   0xd   :  { %38 = vadd.xlane.f32.xlu0 %v37_v12 }
  0x92   :  { %v27_v13 = vpop.xlane.xlu0 %26  ;;  %v33_v14 = vpop.xlane.xlu1 %32 }
  0x93   :  { %v41_v15 = vmul.f32 0.03125, %v27_v13  ;;  %v43_v16 = vmul.f32 0.03125, %v33_v14 }
  0x95   :  { %v46_v17 = vsub.f32 %v160_v2, %v41_v15  ;;  %v48_v18 = vsub.f32 %v164_v3, %v43_v16 }
  0x96   :  { %v30_v19 = vpop.xlane.xlu0 %29  ;;  %v36_v20 = vpop.xlane.xlu1 %35 }
  0x97   :  { %v42_v21 = vmul.f32 0.03125, %v30_v19  ;;  %v44_v22 = vmul.f32 0.03125, %v36_v20  ;;  %v51_v23 = vmul.f32 %v46_v17, %v46_v17  ;;  %v53_v24 = vmul.f32 %v48_v18, %v48_v18 }
  0x99   :  { %v47_v25 = vsub.f32 %v161_v4, %v42_v21  ;;  %v49_v26 = vsub.f32 %v165_v5, %v44_v22  ;;  %v56_v27 = vsel %vm24_vm0, %v51_v23, 0.0  ;;  %v62_v30 = vsel %vm24_vm0, %v53_v24, 0.0 }
  0x9a   :  { %57 = vadd.xlane.f32.xlu1 %v56_v27  ;;  %v39_v28 = vpop.xlane.xlu0 %38 }
  0x9b   :  { %v45_v29 = vmul.f32 0.03125, %v39_v28  ;;  %v52_v31 = vmul.f32 %v47_v25, %v47_v25  ;;  %v54_v32 = vmul.f32 %v49_v26, %v49_v26 }
  0x9d   :  { %v50_v33 = vsub.f32 %v23_v11, %v45_v29  ;;  %v59_v34 = vsel %vm24_vm0, %v52_v31, 0.0  ;;  %v65_v35 = vsel %vm24_vm0, %v54_v32, 0.0 }
  0x9e   :  { %63 = vadd.xlane.f32.xlu1 %v62_v30  ;;  %60 = vadd.xlane.f32.xlu0 %v59_v34 }
  0x9f   :  { %v55_v36 = vmul.f32 %v50_v33, %v50_v33 }
  0xa1   :  { %v68_v37 = vsel %vm24_vm0, %v55_v36, 0.0 }
  0xa2   :  { %66 = vadd.xlane.f32.xlu0 %v65_v35  ;;  %69 = vadd.xlane.f32.xlu1 %v68_v37 }
 0x127   :  { %v58_v38 = vpop.xlane.xlu1 %57 }
 0x128   :  { %v71_v39 = vmul.f32 0.03125, %v58_v38 }
 0x12a   :  { %v76_v40 = vadd.f32 1e-05, %v71_v39 }
 0x12b   :  { %v64_v41 = vpop.xlane.xlu1 %63  ;;  %v61_v42 = vpop.xlane.xlu0 %60 }
 0x12c   :  { %167 = vrsqrt.f32 %v76_v40  ;;  %v73_v43 = vmul.f32 0.03125, %v64_v41  ;;  %v72_v44 = vmul.f32 0.03125, %v61_v42 }
 0x12e   :  { %v78_v45 = vadd.f32 1e-05, %v73_v43  ;;  %v77_v46 = vadd.f32 1e-05, %v72_v44 }
 0x12f   :  { %v70_v47 = vpop.xlane.xlu1 %69  ;;  %v67_v48 = vpop.xlane.xlu0 %66 }
 0x130   :  { %169 = vrsqrt.f32 %v78_v45  ;;  %v75_v49 = vmul.f32 0.03125, %v70_v47  ;;  %v74_v50 = vmul.f32 0.03125, %v67_v48 }
 0x131   :  { %171 = vrsqrt.f32 %v77_v46 }
 0x132   :  { %v80_v51 = vadd.f32 1e-05, %v75_v49  ;;  %v79_v52 = vadd.f32 1e-05, %v74_v50 }
 0x134   :  { %173 = vrsqrt.f32 %v80_v51 }
 0x135   :  { %175 = vrsqrt.f32 %v79_v52 }
 0x136   :  { %v168_v53 = vpop.eup %167 }
 0x137   :  { %v86_v55 = vmul.f32 %v168_v53, %v46_v17 }
 0x139   :  { %v98_v57 = vmul.f32 %v146_v54, %v86_v55 }
 0x13a   :  { %v170_v58 = vpop.eup %169 }
 0x13b   :  { %v172_v59 = vpop.eup %171  ;;  %v110_v60 = vadd.f32 %v147_v56, %v98_v57  ;;  %v88_v61 = vmul.f32 %v170_v58, %v48_v18 }
 0x13c   :  { %v87_v62 = vmul.f32 %v172_v59, %v47_v25 }
 0x13d   :  { %v153_v63 = vpack.c.bf16 %v110_v60, %v110_v60  ;;  %v100_v0 = vmul.f32 %v146_v54, %v88_v61 }
 0x13e   :  { %v174_v1 = vpop.eup %173  ;;  %v99_v2 = vmul.f32 %v146_v54, %v87_v62 }
 0x13f   :  { %v176_v3 = vpop.eup %175  ;;  %137 = vst.msk [vmem:[%s245_s3] sm:$0xf] %vm136_vm1, %v153_v63  ;;  %v112_v4 = vadd.f32 %v147_v56, %v100_v0  ;;  %v90_v5 = vmul.f32 %v174_v1, %v50_v33 }
 0x140   :  { %v111_v6 = vadd.f32 %v147_v56, %v99_v2  ;;  %v89_v7 = vmul.f32 %v176_v3, %v49_v26 }
 0x141   :  { %v155_v8 = vpack.c.bf16 %v112_v4, %v112_v4  ;;  %v102_v9 = vmul.f32 %v146_v54, %v90_v5 }
 0x142   :  { %v154_v10 = vpack.c.bf16 %v111_v6, %v111_v6  ;;  %v101_v11 = vmul.f32 %v146_v54, %v89_v7 }
 0x143   :  { %139 = vst.msk [vmem:[%s245_s3 + $0x8] sm:$0xf] %vm136_vm1, %v155_v8  ;;  %v114_v12 = vadd.f32 %v147_v56, %v102_v9 }
 0x144   :  { %138 = vst.msk [vmem:[%s245_s3 + $0x4] sm:$0xf] %vm136_vm1, %v154_v10  ;;  %v113_v13 = vadd.f32 %v147_v56, %v101_v11 }
 0x145   :  { %v157_v14 = vpack.c.bf16 %v114_v12, %v114_v12 }
 0x146   :  { %v156_v15 = vpack.c.bf16 %v113_v13, %v113_v13 }
 0x147   :  { %141 = vst.msk [vmem:[%s245_s3 + $0x10] sm:$0xf] %vm136_vm1, %v157_v14 }
 0x148   :  { %140 = vst.msk [vmem:[%s245_s3 + $0xc] sm:$0xf] %vm136_vm1, %v156_v15 }

// kernel: vit_forward.16
= control target key start
LH: loop header
LB: loop body
LE: loop exit
PB: predicated region body
PF: predicated region fallthrough
CT: control target
= control target key end

     0   :  { %s306_s1 = inlined_call_operand.vmem [shape: bf16[128,128], index: 1, kind: input, shape index: {}]   ;;  %s307_s0 = inlined_call_operand.vmem [shape: bf16[32,128], index: 0, kind: input, shape index: {}]   ;;  %s308_s2 = inlined_call_operand.vmem [shape: f32[1,128], index: 2, kind: input, shape index: {}]   ;;  %s309_s3 = inlined_call_operand.vmem [shape: f32[32,128], index: 3, kind: output, shape index: {}]  }
   0x1   :  { %v231_v0 = vld [vmem:[%s306_s1] sm:$0xff]   ;;  %v232_v1 = vld [vmem:[%s306_s1 + $0x8] sm:$0xff]   ;;  %v233_v2 = vld [vmem:[%s306_s1 + $0x10] sm:$0xff]  }
   0x2   :  { %211 = vmatprep.subr.bf16.mxu0 %v231_v0  ;;  %v234_v3 = vld [vmem:[%s306_s1 + $0x18] sm:$0xff]   ;;  %v239_v4 = vld [vmem:[%s307_s0] sm:$0xff]   ;;  %v236_v6 = vld [vmem:[%s306_s1 + $0x28] sm:$0xff]  }
   0x3   :  { %212 = vmatpush3.bf16.msra.mxu0 %v231_v0  ;;  %227 = vmatprep.mubr.bf16.mxu0 %v239_v4  ;;  %v235_v5 = vld [vmem:[%s306_s1 + $0x20] sm:$0xff]   ;;  %v237_v7 = vld [vmem:[%s306_s1 + $0x30] sm:$0xff]   ;;  %v238_v8 = vld [vmem:[%s306_s1 + $0x38] sm:$0xff]  }
   0x4   :  { %213 = vmatprep.subr.bf16.mxu0 %v232_v1  ;;  %v240_v9 = vld [vmem:[%s307_s0 + $0x8] sm:$0xff]   ;;  %v200_v10 = vld [vmem:[%s308_s2] ss:$0 sm:$0xff] }
   0x7   :  { %214 = vmatpush3.bf16.msra.mxu0 %v232_v1 }
   0x8   :  { %215 = vmatprep.subr.bf16.mxu0 %v233_v2 }
   0xb   :  { %216 = vmatpush3.bf16.msra.mxu0 %v233_v2 }
   0xc   :  { %217 = vmatprep.subr.bf16.mxu0 %v234_v3 }
   0xf   :  { %218 = vmatpush3.bf16.msra.mxu0 %v234_v3 }
  0x10   :  { %219 = vmatprep.subr.bf16.mxu0 %v235_v5 }
  0x13   :  { %220 = vmatpush3.bf16.msra.mxu0 %v235_v5 }
  0x14   :  { %221 = vmatprep.subr.bf16.mxu0 %v236_v6 }
  0x17   :  { %222 = vmatpush3.bf16.msra.mxu0 %v236_v6 }
  0x18   :  { %223 = vmatprep.subr.bf16.mxu0 %v237_v7 }
  0x1b   :  { %224 = vmatpush3.bf16.msra.mxu0 %v237_v7 }
  0x1c   :  { %225 = vmatprep.subr.bf16.mxu0 %v238_v8 }
  0x1f   :  { %226 = vmatpush3.bf16.msra.mxu0 %v238_v8 }
  0x22   :  { %228 = vmatmul.mubr.bf16.vlgmr.msra.gmra.mrb[0].mxu0 %v240_v9 }
  0xf5   :  { %v229_v11 = vpop.f32.mrb[0].mxu0 }
  0xf6   :  { %v180_v12 = vadd.f32 %v229_v11, %v200_v10  ;;  %v141_v13 = vpop.f32.mrb[1].mxu0 }
  0xf7   :  { %v178_v14 = vadd.f32 %v200_v10, %v141_v13  ;;  %v230_v15 = vpop.f32.mrb[2].mxu0 }
  0xf8   :  { %184 = vst [vmem:[%s309_s3 + $0x10] sm:$0xff] %v180_v12  ;;  %v181_v16 = vadd.f32 %v230_v15, %v200_v10  ;;  %v144_v17 = vpop.f32.mrb[3].mxu0 }
  0xf9   :  { %182 = vst [vmem:[%s309_s3] sm:$0xff] %v178_v14  ;;  %v179_v18 = vadd.f32 %v200_v10, %v144_v17 }
  0xfa   :  { %185 = vst [vmem:[%s309_s3 + $0x18] sm:$0xff] %v181_v16 }
  0xfb   :  { %183 = vst [vmem:[%s309_s3 + $0x8] sm:$0xff] %v179_v18 }

// kernel: vit_forward.18
= control target key start
LH: loop header
LB: loop body
LE: loop exit
PB: predicated region body
PF: predicated region fallthrough
CT: control target
= control target key end

     0   :  { %v331_v0 = vmov 0.0   ;;  %vm332_vm0 = vmmov 0   ;;  %s401_s1 = inlined_call_operand.vmem [shape: bf16[128,128], index: 1, kind: input, shape index: {}]   ;;  %s402_s0 = inlined_call_operand.vmem [shape: bf16[40,128], index: 0, kind: input, shape index: {}]   ;;  %s403_s2 = inlined_call_operand.vmem [shape: f32[1,128], index: 2, kind: input, shape index: {}]   ;;  %s404_s3 = inlined_call_operand.vmem [shape: bf16[40,128], index: 3, kind: output, shape index: {}]  }
   0x1   :  { %302 = vmatprep.subr.bf16.mxu1 %v331_v0  ;;  %v320_v1 = vld [vmem:[%s401_s1] sm:$0xff]   ;;  %274 = vmatprep.subr.bf16.mxu0 %v331_v0  ;;  %v321_v2 = vld [vmem:[%s401_s1 + $0x8] sm:$0xff]   ;;  %v322_v3 = vld [vmem:[%s401_s1 + $0x10] sm:$0xff]  }
   0x2   :  { %294 = vmatprep.mubr.msk.bf16.mxu1 %vm332_vm0, %v331_v0  ;;  %290 = vmatprep.mubr.msk.bf16.mxu0 %vm332_vm0, %v331_v0  ;;  %v323_v4 = vld [vmem:[%s401_s1 + $0x18] sm:$0xff]   ;;  %v324_v5 = vld [vmem:[%s401_s1 + $0x20] sm:$0xff]   ;;  %v325_v6 = vld [vmem:[%s401_s1 + $0x28] sm:$0xff]  }
   0x3   :  { %310 = vmatpush3.bf16.msra.mxu1 %v320_v1  ;;  %275 = vmatpush3.bf16.msra.mxu0 %v320_v1  ;;  %v326_v7 = vld [vmem:[%s401_s1 + $0x30] sm:$0xff]   ;;  %v327_v8 = vld [vmem:[%s401_s1 + $0x38] sm:$0xff]   ;;  %v328_v9 = vld [vmem:[%s402_s0 + $0x8] sm:$0xff]  }
   0x4   :  { %303 = vmatprep.subr.bf16.mxu1 %v331_v0  ;;  %276 = vmatprep.subr.bf16.mxu0 %v331_v0  ;;  %v329_v10 = vld [vmem:[%s402_s0] sm:$0xff]   ;;  %v330_v11 = vld [vmem:[%s402_s0 + $0x10] ss:$0 sps:$4 sm:$0xff]  }
   0x5   :  { %v241_v13 = vld [vmem:[%s403_s2] ss:$0 sm:$0xff] }
   0x7   :  { %311 = vmatpush3.bf16.msra.mxu1 %v321_v2  ;;  %277 = vmatpush3.bf16.msra.mxu0 %v321_v2 }
   0x8   :  { %304 = vmatprep.subr.bf16.mxu1 %v331_v0  ;;  %278 = vmatprep.subr.bf16.mxu0 %v331_v0 }
   0xb   :  { %312 = vmatpush3.bf16.msra.mxu1 %v322_v3  ;;  %279 = vmatpush3.bf16.msra.mxu0 %v322_v3 }
   0xc   :  { %305 = vmatprep.subr.bf16.mxu1 %v331_v0  ;;  %280 = vmatprep.subr.bf16.mxu0 %v331_v0 }
   0xf   :  { %313 = vmatpush3.bf16.msra.mxu1 %v323_v4  ;;  %281 = vmatpush3.bf16.msra.mxu0 %v323_v4 }
  0x10   :  { %306 = vmatprep.subr.bf16.mxu1 %v331_v0  ;;  %282 = vmatprep.subr.bf16.mxu0 %v331_v0 }
  0x13   :  { %314 = vmatpush3.bf16.msra.mxu1 %v324_v5  ;;  %283 = vmatpush3.bf16.msra.mxu0 %v324_v5 }
  0x14   :  { %307 = vmatprep.subr.bf16.mxu1 %v331_v0  ;;  %284 = vmatprep.subr.bf16.mxu0 %v331_v0 }
  0x17   :  { %315 = vmatpush3.bf16.msra.mxu1 %v325_v6  ;;  %285 = vmatpush3.bf16.msra.mxu0 %v325_v6 }
  0x18   :  { %308 = vmatprep.subr.bf16.mxu1 %v331_v0  ;;  %286 = vmatprep.subr.bf16.mxu0 %v331_v0 }
  0x1b   :  { %316 = vmatpush3.bf16.msra.mxu1 %v326_v7  ;;  %287 = vmatpush3.bf16.msra.mxu0 %v326_v7 }
  0x1c   :  { %309 = vmatprep.subr.bf16.mxu1 %v331_v0  ;;  %288 = vmatprep.subr.bf16.mxu0 %v331_v0 }
  0x1f   :  { %317 = vmatpush3.bf16.msra.mxu1 %v327_v8  ;;  %289 = vmatpush3.bf16.msra.mxu0 %v327_v8 }
  0x22   :  { %295 = vmatmul.mubr.bf16.vlgmr.msra.gmra.mrb[0].mxu1 %v328_v9  ;;  %291 = vmatmul.mubr.bf16.vlgmr.msra.gmra.mrb[0].mxu0 %v329_v10 }
  0x23   :  { %298 = vmatprep.mubr.msk.bf16.mxu1 %vm332_vm0, %v331_v0 }
  0x2a   :  { %299 = vmatmul.mubr.bf16.gmra.mrb[4].mxu1 %v330_v11 }
  0xf5   :  { %v156_v12 = vpop.f32.mrb[0].mxu1  ;;  %v148_v14 = vpop.f32.mrb[0].mxu0 }
  0xf6   :  { %v296_v15 = vpop.f32.mrb[1].mxu1  ;;  %v195_v16 = vadd.f32 %v241_v13, %v148_v14  ;;  %v292_v17 = vpop.f32.mrb[1].mxu0  ;;  %v197_v20 = vadd.f32 %v241_v13, %v156_v12 }
  0xf7   :  { %v159_v18 = vpop.f32.mrb[2].mxu1  ;;  %v151_v19 = vpop.f32.mrb[2].mxu0 }
  0xf8   :  { %v198_v21 = vadd.f32 %v241_v13, %v159_v18  ;;  %v297_v22 = vpop.f32.mrb[3].mxu1  ;;  %v196_v23 = vadd.f32 %v241_v13, %v151_v19  ;;  %v293_v24 = vpop.f32.mrb[3].mxu0 }
  0xfa   :  { %v260_v25 = vpack.c.bf16 %v198_v21, %v197_v20  ;;  %v255_v26 = vpack.c.bf16 %v196_v23, %v195_v16 }
  0xfc   :  { %262 = vst [vmem:[%s404_s3 + $0x8] sm:$0xff] %v260_v25   ;;  %256 = vst [vmem:[%s404_s3] sm:$0xff] %v255_v26  }
  0xfd   :  { %v164_v27 = vpop.f32.mrb[4].mxu1 }
  0xfe   :  { %v199_v28 = vadd.f32 %v241_v13, %v164_v27  ;;  %v300_v29 = vpop.f32.mrb[5].mxu1 }
  0xff   :  { %v167_v30 = vpop.f32.mrb[6].mxu1 }
 0x100   :  { %v251_v31 = vpack.c.bf16 %v199_v28, %v199_v28  ;;  %v301_v32 = vpop.f32.mrb[7].mxu1 }
 0x102   :  { %225 = vst [vmem:[%s404_s3 + $0x10] sm:$0xf] %v251_v31 }

// kernel: vit_forward.19
= control target key start
LH: loop header
LB: loop body
LE: loop exit
PB: predicated region body
PF: predicated region fallthrough
CT: control target
= control target key end

     0   :  { %s1272_s6 = smov 0   ;;  %s1430_s0 = inlined_call_operand.vmem [shape: bf16[2,17,96], index: 0, kind: input, shape index: {}]   ;;  %s1431_s1 = inlined_call_operand.vmem [shape: bf16[2,17,32], index: 1, kind: output, shape index: {}]  }
   0x1 LB: > { %s993_s7 = sadd.s32 4294967295, %s1245_s6   ;;  %p997_p0 = scmp.ge.s32.totalorder %s1245_s6, 1  ;;  %s1245_s6 = sphi %s1272_s6, %s11_s6  }
   0x2   : > { %p87_p1 = scmp.lt.s32.totalorder %s1245_s6, 3 }
   0x4   : > { %p88_p2 = pnand %p997_p0, %p87_p1 }
   0x5   : > { %p107_p3 = scmp.lt.s32.totalorder (!%p88_p2), %s993_s7, 1  ;;  %s1247_s12 = smov (!%p88_p2), 96   ;;  %vm145_vm0 = vcmask (!%p88_p2), 64512   ;;  %vm213_vm1 = vcmask (!%p88_p2), 131072   ;;  %vm206_vm2 = vcmask (!%p88_p2), 138240   ;;  %vm254_vm3 = vcmask (!%p88_p2), 1040384  }
   0x6   : > { %91 = sbr.rel (%p88_p2) target bundleno = 2687 (0xa7f), region = 24  ;;  %s1248_s13 = smov (!%p88_p2), 64   ;;  %v1251_v50 = vmov (!%p88_p2), 0   ;;  %vm908_vm4 = vcmask (!%p88_p2), 130048   ;;  %vm912_vm5 = vcmask (!%p88_p2), 195584   ;;  %vm932_vm6 = vcmask (!%p88_p2), 253952  }
   0x7   : > { %s1249_s14 = smov (!%p88_p2), 88   ;;  %s1250_s15 = smov (!%p88_p2), 120   ;;  %v1318_v51 = vsel (!%p88_p2), %vm254_vm3, 65535, %v1251_v50  ;;  %vm933_vm7 = vsmask.f32 (!%p88_p2), 256  ;;  %vm929_vm8 = vcmask (!%p88_p2), 257024  }
   0x8   : > { %s1252_s16 = smov (!%p88_p2), 56   ;;  %s1253_s17 = smov (!%p88_p2), 80   ;;  %vm934_vm9 = vmand (!%p88_p2), %vm932_vm6, %vm933_vm7 }
   0x9   : > { %s1254_s18 = smov (!%p88_p2), 112   ;;  %s1255_s19 = smov (!%p88_p2), 48  }
   0xa   : > { %s1256_s20 = smov (!%p88_p2), 72   ;;  %s1257_s21 = smov (!%p88_p2), 104  }
   0xb   : > { %s1258_s22 = smov (!%p88_p2), 40   ;;  %s1259_s23 = smov (!%p88_p2), 8  }
   0xc   : > { %s1260_s24 = smov (!%p88_p2), 16   ;;  %s1261_s25 = smov (!%p88_p2), 24  }
   0xd   : > { %s1433_s7 = smov (!%p107_p3, %s993_s7), 1 }
   0xe   : > { %s1144_s8 = smul.u32 12, %s1433_s7 }
  0x10   : > { %s1288_s11 = scalar_lea.vmem %s1430_s0, %s1144_s8  ;;  %s116_s28 = scalar_lea.vmem %s1431_s1, %s1144_s8 }
  0x11   : > { %v119_v0 = vld [vmem:[%s1288_s11] sm:$0xf]  ;;  %v120_v1 = vld [vmem:[%s1288_s11 + $0x4] sm:$0xf]  ;;  %v121_v2 = vld [vmem:[%s1288_s11 + $0x8] sm:$0x1] }
  0x12   : > { %v1002_v3 = vcombine.low %v119_v0, %v120_v1  ;;  %v122_v4 = vmul.bf16 1052065461, %v119_v0  ;;  %v123_v5 = vmul.bf16 1052065461, %v120_v1  ;;  %v1003_v6 = vcombine.low %v121_v2, %v121_v2  ;;  %v308_v21 = vld [vmem:[%s1288_s11] sm:$0xf] }
  0x13   : > { %v124_v12 = vmul.bf16 1052065461, %v121_v2  ;;  %v309_v22 = vld [vmem:[%s1288_s11 + $0x4] sm:$0xf]  ;;  %v311_v24 = vmul.bf16 1052065461, %v308_v21 }
  0x14   : > { %141 = vrot.lane.b32.xlu0 %v1002_v3, %s1247_s12  ;;  %v1000_v7 = vcombine.low %v122_v4, %v123_v5  ;;  %v1305_v23 = vcombine.low %v308_v21, %v309_v22  ;;  %v312_v25 = vmul.bf16 1052065461, %v309_v22  ;;  %v310_v43 = vld [vmem:[%s1288_s11 + $0x8] sm:$0x1] }
  0x15   : > { %v1001_v13 = vcombine.low %v124_v12, %v124_v12  ;;  %v1314_v44 = vcombine.low %v310_v43, %v310_v43  ;;  %v313_v45 = vmul.bf16 1052065461, %v310_v43 }
  0x16   : > { %1076 = vmatprep.mubr.msk.bf16.mxu0 %vm145_vm0, %v1000_v7  ;;  %v1008_v26 = vcombine.low %v311_v24, %v312_v25 }
  0x17   : > { %v1009_v46 = vcombine.low %v313_v45, %v313_v45 }
  0x18   : > { %143 = vrot.lane.b32.xlu0 %v1003_v6, %s1247_s12 }
  0x86   : > { %v142_v8 = vpop.permute.xlu0 %141 }
  0x87   : > { %1136 = vmatprep.subr.msk.bf16.mxu0 %vm145_vm0, %v142_v8  ;;  %v153_v9 = vsel %vm145_vm0, %v142_v8, 0 }
  0x88   : > { %1073 = vmatpush3.bf16.xpose.msra.mxu0 %v153_v9 }
  0x8a   : > { %v144_v10 = vpop.permute.xlu0 %143 }
  0x8b   : > { %1137 = vmatprep.subr.msk.bf16.mxu0 %vm145_vm0, %v144_v10  ;;  %v156_v11 = vsel %vm145_vm0, %v144_v10, 0 }
  0x90   : > { %1075 = vmatpush3.bf16.xpose.msra.mxu0 %v156_v11 }
  0x97   : > { %1077 = vmatmul.mubr.msk.bf16.vlgmr.msra.gmra.mrb[0].mxu0 %vm145_vm0, %v1001_v13 }
 0x16a   : > { %v1078_v14 = vpop.f32.mrb[0].mxu0 }
 0x16b   : > { %v192_v15 = vpop.f32.mrb[1].mxu0  ;;  %v214_v16 = vsel %vm213_vm1, %v1078_v14, -inf }
 0x16c   : > { %215 = vmax.xlane.f32.xlu0 %v214_v16  ;;  %v1079_v17 = vpop.f32.mrb[2].mxu0  ;;  %v207_v18 = vsel %vm206_vm2, %v192_v15, -inf }
 0x16d   : > { %208 = vmax.xlane.f32.xlu1 %v207_v18  ;;  %v195_v19 = vpop.f32.mrb[3].mxu0 }
 0x16e   : > { %v210_v20 = vsel %vm206_vm2, %v195_v19, -inf }
 0x171   : > { %211 = vmax.xlane.f32.xlu1 %v210_v20 }
 0x182   : > { %243 = vrot.lane.b32.xlu1 %v1002_v3, %s1248_s13  ;;  %334 = vrot.lane.b32.xlu0 %v1305_v23, %s1249_s14 }
 0x1f9   : > { %v216_v27 = vpop.xlane.xlu0 %215 }
 0x1fa   : > { %v219_v28 = vsub.f32 %v1078_v14, %v216_v27  ;;  %v209_v29 = vpop.xlane.xlu1 %208 }
 0x1fb   : > { %v217_v30 = vsub.f32 %v192_v15, %v209_v29 }
 0x1fc   : > { %v224_v31 = vmul.f32 1.442695, %v219_v28 }
 0x1fd   : > { %v220_v32 = vmul.f32 1.442695, %v217_v30  ;;  %v335_v54 = vpop.permute.xlu0 %334 }
 0x1fe   : > { %1191 = vpow2.f32 %v224_v31  ;;  %v212_v33 = vpop.xlane.xlu1 %211  ;;  %v345_v63 = vsel %vm145_vm0, %v335_v54, 0  ;;  %v495_v31 = vld [vmem:[%s1288_s11] sm:$0xf] }
 0x1ff   : > { %v218_v34 = vsub.f32 %v195_v19, %v212_v33  ;;  %1193 = vpow2.f32 %v220_v32  ;;  %v496_v32 = vld [vmem:[%s1288_s11 + $0x4] sm:$0xf] }
 0x200   : > { %v1018_v33 = vcombine.low %v495_v31, %v496_v32 }
 0x201   : > { %v222_v35 = vmul.f32 1.442695, %v218_v34  ;;  %v497_v34 = vld [vmem:[%s1288_s11 + $0x8] sm:$0x1] }
 0x202   : > { %v244_v36 = vpop.permute.xlu1 %243 }
 0x203   : > { %1080 = vmatprep.subr.bf16.mxu1 %v244_v36  ;;  %1195 = vpow2.f32 %v222_v35  ;;  %v1346_v35 = vcombine.low %v497_v34, %v497_v34 }
 0x204   : > { %1081 = vmatpush3.bf16.msra.mxu1 %v244_v36  ;;  %v500_v36 = vmul.bf16 1052065461, %v497_v34 }
 0x208   : > { %v1192_v37 = vpop.eup %1191 }
 0x209   : > { %v232_v38 = vsel %vm213_vm1, %v1192_v37, 0.0  ;;  %v1194_v39 = vpop.eup %1193 }
 0x20a   : > { %233 = vadd.xlane.f32.xlu1 %v232_v38  ;;  %v226_v40 = vsel %vm206_vm2, %v1194_v39, 0.0  ;;  %v498_v38 = vmul.bf16 1052065461, %v495_v31  ;;  %v684_v31 = vld [vmem:[%s1288_s11 + $0x8] sm:$0x1] }
 0x20d   : > { %v1196_v41 = vpop.eup %1195 }
 0x20e   : > { %227 = vadd.xlane.f32.xlu1 %v226_v40  ;;  %v229_v42 = vsel %vm206_vm2, %v1196_v41, 0.0 }
 0x212   : > { %230 = vadd.xlane.f32.xlu1 %v229_v42 }
 0x223   : > { %245 = vrot.lane.b32.xlu1 %v1003_v6, %s1248_s13 }
 0x227   : > { %336 = vrot.lane.b32.xlu1 %v1314_v44, %s1249_s14 }
 0x22b   : > { %322 = vrot.lane.b32.xlu1 %v1008_v26, %s1250_s15 }
 0x22f   : > { %324 = vrot.lane.b32.xlu1 %v1009_v46, %s1250_s15 }
 0x297   : > { %v234_v47 = vpop.xlane.xlu1 %233 }
 0x298   : > { %1197 = vrcp.f32 %v234_v47 }
 0x29b   : > { %v228_v48 = vpop.xlane.xlu1 %227 }
 0x29c   : > { %1199 = vrcp.f32 %v228_v48 }
 0x29f   : > { %v231_v49 = vpop.xlane.xlu1 %230 }
 0x2a0   : > { %1201 = vrcp.f32 %v231_v49 }
 0x2a2   : > { %v1198_v55 = vpop.eup %1197 }
 0x2a3   : > { %v246_v52 = vpop.permute.xlu1 %245  ;;  %v240_v59 = vmul.f32 %v1198_v55, %v1192_v37  ;;  %v1017_v37 = vcombine.low %v500_v36, %v500_v36 }
 0x2a4   : > { %v258_v53 = vand.u32 %v1318_v51, %v246_v52 }
 0x2a5   : > { %v242_v0 = vpack.c.bf16 %v240_v59, %v240_v59 }
 0x2a6   : > { %1082 = vmatprep.subr.bf16.mxu1 %v258_v53  ;;  %v1200_v56 = vpop.eup %1199 }
 0x2a7   : > { %1083 = vmatpush3.bf16.msra.mxu1 %v258_v53  ;;  %v337_v57 = vpop.permute.xlu1 %336  ;;  %v238_v60 = vmul.f32 %v1200_v56, %v1194_v39  ;;  %v499_v39 = vmul.bf16 1052065461, %v496_v32  ;;  %v1381_v32 = vcombine.low %v684_v31, %v684_v31 }
 0x2a8   : > { %1138 = vmatprep.subr.msk.bf16.mxu1 %vm145_vm0, %v335_v54  ;;  %v348_v2 = vsel %vm145_vm0, %v337_v57, 0 }
 0x2a9   : > { %v1016_v40 = vcombine.low %v498_v38, %v499_v39 }
 0x2aa   : > { %v1202_v58 = vpop.eup %1201 }
 0x2ab   : > { %v239_v61 = vmul.f32 %v1202_v58, %v1196_v41  ;;  %v323_v1 = vpop.permute.xlu1 %322 }
 0x2ad   : > { %v241_v62 = vpack.c.bf16 %v239_v61, %v238_v60 }
 0x2af   : > { %1084 = vmatprep.mubr.msk.bf16.mxu1 %vm206_vm2, %v241_v62  ;;  %v325_v3 = vpop.permute.xlu1 %324 }
 0x2b0   : > { %1085 = vmatmul.mubr.msk.bf16.vlgmr.msra.gmra.mrb[0].mxu1 %vm206_vm2, %v242_v0 }
 0x2b1   : > { %1089 = vmatpush3.bf16.xpose.msra.mxu1 %v345_v63  ;;  %1092 = vmatprep.mubr.msk.bf16.mxu1 %vm145_vm0, %v323_v1 }
 0x2b2   : > { %1139 = vmatprep.subr.msk.bf16.mxu1 %vm145_vm0, %v337_v57 }
 0x2b9   : > { %1091 = vmatpush3.bf16.xpose.msra.mxu1 %v348_v2 }
 0x2c0   : > { %1093 = vmatmul.mubr.msk.bf16.vlgmr.msra.gmra.mrb[4].mxu1 %vm145_vm0, %v325_v3 }
 0x383   : > { %v1329_v4 = vpop.f32.mrb[0].mxu1 }
 0x384   : > { %v1331_v5 = vpop.f32.mrb[1].mxu1 }
 0x385   : > { %v1087_v6 = vpop.f32.mrb[2].mxu1 }
 0x386   : > { %v1333_v7 = vpop.f32.mrb[3].mxu1 }
 0x393   : > { %v1094_v8 = vpop.f32.mrb[4].mxu1 }
 0x394   : > { %v384_v9 = vpop.f32.mrb[5].mxu1  ;;  %v404_v14 = vsel %vm213_vm1, %v1094_v8, -inf }
 0x395   : > { %v1095_v10 = vpop.f32.mrb[6].mxu1  ;;  %v398_v11 = vsel %vm206_vm2, %v384_v9, -inf }
 0x396   : > { %399 = vmax.xlane.f32.xlu1 %v398_v11  ;;  %v387_v12 = vpop.f32.mrb[7].mxu1 }
 0x397   : > { %v401_v13 = vsel %vm206_vm2, %v387_v12, -inf }
 0x398   : > { %402 = vmax.xlane.f32.xlu0 %v401_v13 }
 0x39a   : > { %405 = vmax.xlane.f32.xlu1 %v404_v14 }
 0x3ab   : > { %433 = vrot.lane.b32.xlu1 %v1305_v23, %s1252_s16 }
 0x423   : > { %v400_v15 = vpop.xlane.xlu1 %399 }
 0x424   : > { %v407_v17 = vsub.f32 %v384_v9, %v400_v15 }
 0x425   : > { %v403_v16 = vpop.xlane.xlu0 %402 }
 0x426   : > { %v408_v18 = vsub.f32 %v387_v12, %v403_v16  ;;  %v410_v22 = vmul.f32 1.442695, %v407_v17 }
 0x427   : > { %v406_v19 = vpop.xlane.xlu1 %405 }
 0x428   : > { %v412_v20 = vmul.f32 1.442695, %v408_v18  ;;  %v409_v21 = vsub.f32 %v1094_v8, %v406_v19 }
 0x42a   : > { %1203 = vpow2.f32 %v412_v20  ;;  %v414_v24 = vmul.f32 1.442695, %v409_v21 }
 0x42b   : > { %v434_v25 = vpop.permute.xlu1 %433 }
 0x42c   : > { %1205 = vpow2.f32 %v414_v24  ;;  %1096 = vmatprep.subr.bf16.mxu0 %v434_v25 }
 0x42d   : > { %1097 = vmatpush3.bf16.msra.mxu0 %v434_v25  ;;  %1207 = vpow2.f32 %v410_v22 }
 0x434   : > { %v1204_v26 = vpop.eup %1203 }
 0x435   : > { %v419_v23 = vsel %vm206_vm2, %v1204_v26, 0.0 }
 0x436   : > { %v1206_v27 = vpop.eup %1205  ;;  %420 = vadd.xlane.f32.xlu1 %v419_v23 }
 0x437   : > { %v422_v28 = vsel %vm213_vm1, %v1206_v27, 0.0  ;;  %v1208_v29 = vpop.eup %1207 }
 0x438   : > { %423 = vadd.xlane.f32.xlu0 %v422_v28  ;;  %v416_v30 = vsel %vm206_vm2, %v1208_v29, 0.0  ;;  %v682_v28 = vld [vmem:[%s1288_s11] sm:$0xf] }
 0x439   : > { %v685_v36 = vmul.bf16 1052065461, %v682_v28 }
 0x43c   : > { %417 = vadd.xlane.f32.xlu0 %v416_v30 }
 0x447   : > { %521 = vrot.lane.b32.xlu1 %v1018_v33, %s1253_s17 }
 0x44b   : > { %523 = vrot.lane.b32.xlu1 %v1346_v35, %s1253_s17 }
 0x44f   : > { %511 = vrot.lane.b32.xlu1 %v1017_v37, %s1254_s18 }
 0x452   : > { %435 = vrot.lane.b32.xlu0 %v1314_v44, %s1252_s16 }
 0x456   : > { %509 = vrot.lane.b32.xlu0 %v1016_v40, %s1254_s18 }
 0x4c3   : > { %v421_v41 = vpop.xlane.xlu1 %420 }
 0x4c5   : > { %v424_v42 = vpop.xlane.xlu0 %423 }
 0x4c6   : > { %1209 = vrcp.f32 %v424_v42 }
 0x4c7   : > { %1211 = vrcp.f32 %v421_v41  ;;  %v522_v47 = vpop.permute.xlu1 %521 }
 0x4c8   : > { %v532_v55 = vsel %vm145_vm0, %v522_v47, 0 }
 0x4c9   : > { %v418_v43 = vpop.xlane.xlu0 %417 }
 0x4ca   : > { %1213 = vrcp.f32 %v418_v43 }
 0x4cb   : > { %v524_v58 = vpop.permute.xlu1 %523 }
 0x4cc   : > { %v535_v59 = vsel %vm145_vm0, %v524_v58, 0 }
 0x4cd   : > { %v436_v45 = vpop.permute.xlu0 %435 }
 0x4ce   : > { %v445_v46 = vand.u32 %v436_v45, %v1318_v51 }
 0x4cf   : > { %v512_v60 = vpop.permute.xlu1 %511 }
 0x4d0   : > { %1098 = vmatprep.subr.bf16.mxu0 %v445_v46  ;;  %v1210_v48 = vpop.eup %1209 }
 0x4d1   : > { %1099 = vmatpush3.bf16.msra.mxu0 %v445_v46  ;;  %v1212_v49 = vpop.eup %1211  ;;  %v430_v44 = vmul.f32 %v1210_v48, %v1206_v27  ;;  %v510_v57 = vpop.permute.xlu0 %509 }
 0x4d2   : > { %1140 = vmatprep.subr.msk.bf16.mxu0 %vm145_vm0, %v522_v47  ;;  %v429_v53 = vmul.f32 %v1212_v49, %v1204_v26 }
 0x4d3   : > { %v432_v56 = vpack.c.bf16 %v430_v44, %v430_v44 }
 0x4d4   : > { %v1214_v50 = vpop.eup %1213 }
 0x4d5   : > { %v428_v52 = vmul.f32 %v1214_v50, %v1208_v29  ;;  %v683_v29 = vld [vmem:[%s1288_s11 + $0x4] sm:$0xf] }
 0x4d6   : > { %v1377_v30 = vcombine.low %v682_v28, %v683_v29  ;;  %v686_v37 = vmul.bf16 1052065461, %v683_v29 }
 0x4d7   : > { %v431_v54 = vpack.c.bf16 %v429_v53, %v428_v52 }
 0x4d8   : > { %v1024_v38 = vcombine.low %v685_v36, %v686_v37 }
 0x4d9   : > { %1100 = vmatprep.mubr.msk.bf16.mxu0 %vm206_vm2, %v431_v54 }
 0x4da   : > { %1101 = vmatmul.mubr.msk.bf16.vlgmr.msra.gmra.mrb[4].mxu0 %vm206_vm2, %v432_v56 }
 0x4db   : > { %1105 = vmatpush3.bf16.xpose.msra.mxu0 %v532_v55  ;;  %1108 = vmatprep.mubr.msk.bf16.mxu0 %vm145_vm0, %v510_v57 }
 0x4dc   : > { %1141 = vmatprep.subr.msk.bf16.mxu0 %vm145_vm0, %v524_v58 }
 0x4e3   : > { %1107 = vmatpush3.bf16.xpose.msra.mxu0 %v535_v59 }
 0x4ea   : > { %1109 = vmatmul.mubr.msk.bf16.vlgmr.msra.gmra.mrb[8].mxu0 %vm145_vm0, %v512_v60 }
 0x5ad   : > { %v1360_v61 = vpop.f32.mrb[4].mxu0 }
 0x5ae   : > { %v1362_v62 = vpop.f32.mrb[5].mxu0 }
 0x5af   : > { %v1168_v63 = vpack.i.bf16 %v1362_v62, %v1360_v61  ;;  %v1103_v0 = vpop.f32.mrb[6].mxu0 }
 0x5b0   : > { %v1366_v1 = vpop.f32.mrb[7].mxu0 }
 0x5bd   : > { %v1110_v2 = vpop.f32.mrb[8].mxu0 }
 0x5be   : > { %v571_v3 = vpop.f32.mrb[9].mxu0  ;;  %v591_v11 = vsel %vm213_vm1, %v1110_v2, -inf }
 0x5bf   : > { %v1111_v6 = vpop.f32.mrb[10].mxu0  ;;  %v585_v8 = vsel %vm206_vm2, %v571_v3, -inf }
 0x5c0   : > { %586 = vmax.xlane.f32.xlu0 %v585_v8  ;;  %v574_v9 = vpop.f32.mrb[11].mxu0 }
 0x5c1   : > { %v588_v10 = vsel %vm206_vm2, %v574_v9, -inf }
 0x5c2   : > { %589 = vmax.xlane.f32.xlu1 %v588_v10 }
 0x5c4   : > { %592 = vmax.xlane.f32.xlu0 %v591_v11 }
 0x5d3   : > { %620 = vrot.lane.b32.xlu1 %v1018_v33, %s1255_s19  ;;  %v687_v33 = vmul.bf16 1052065461, %v684_v31 }
 0x5d5   : > { %v1025_v34 = vcombine.low %v687_v33, %v687_v33 }
 0x64d   : > { %v587_v12 = vpop.xlane.xlu0 %586 }
 0x64e   : > { %v594_v14 = vsub.f32 %v571_v3, %v587_v12 }
 0x64f   : > { %v590_v13 = vpop.xlane.xlu1 %589 }
 0x650   : > { %v595_v15 = vsub.f32 %v574_v9, %v590_v13  ;;  %v597_v20 = vmul.f32 1.442695, %v594_v14 }
 0x651   : > { %v593_v16 = vpop.xlane.xlu0 %592 }
 0x652   : > { %v599_v17 = vmul.f32 1.442695, %v595_v15  ;;  %v596_v18 = vsub.f32 %v1110_v2, %v593_v16 }
 0x653   : > { %v621_v19 = vpop.permute.xlu1 %620 }
 0x654   : > { %1215 = vpow2.f32 %v599_v17  ;;  %v601_v21 = vmul.f32 1.442695, %v596_v18  ;;  %1112 = vmatprep.subr.bf16.mxu1 %v621_v19 }
 0x655   : > { %1113 = vmatpush3.bf16.msra.mxu1 %v621_v19 }
 0x656   : > { %1217 = vpow2.f32 %v601_v21 }
 0x657   : > { %1219 = vpow2.f32 %v597_v20 }
 0x65e   : > { %v1216_v22 = vpop.eup %1215 }
 0x65f   : > { %v606_v24 = vsel %vm206_vm2, %v1216_v22, 0.0 }
 0x660   : > { %v1218_v25 = vpop.eup %1217  ;;  %607 = vadd.xlane.f32.xlu1 %v606_v24 }
 0x661   : > { %v609_v26 = vsel %vm213_vm1, %v1218_v25, 0.0  ;;  %v1220_v23 = vpop.eup %1219 }
 0x662   : > { %610 = vadd.xlane.f32.xlu0 %v609_v26  ;;  %v603_v27 = vsel %vm206_vm2, %v1220_v23, 0.0 }
 0x666   : > { %604 = vadd.xlane.f32.xlu0 %v603_v27 }
 0x671   : > { %708 = vrot.lane.b32.xlu1 %v1377_v30, %s1256_s20 }
 0x675   : > { %710 = vrot.lane.b32.xlu1 %v1381_v32, %s1256_s20 }
 0x679   : > { %698 = vrot.lane.b32.xlu1 %v1025_v34, %s1257_s21 }
 0x67c   : > { %622 = vrot.lane.b32.xlu0 %v1346_v35, %s1255_s19 }
 0x680   : > { %696 = vrot.lane.b32.xlu0 %v1024_v38, %s1257_s21 }
 0x6ed   : > { %v608_v39 = vpop.xlane.xlu1 %607 }
 0x6ef   : > { %v611_v40 = vpop.xlane.xlu0 %610 }
 0x6f0   : > { %1221 = vrcp.f32 %v611_v40 }
 0x6f1   : > { %1223 = vrcp.f32 %v608_v39  ;;  %v709_v45 = vpop.permute.xlu1 %708 }
 0x6f2   : > { %v719_v52 = vsel %vm145_vm0, %v709_v45, 0 }
 0x6f3   : > { %v605_v41 = vpop.xlane.xlu0 %604 }
 0x6f4   : > { %1225 = vrcp.f32 %v605_v41 }
 0x6f5   : > { %v711_v55 = vpop.permute.xlu1 %710 }
 0x6f6   : > { %v722_v56 = vsel %vm145_vm0, %v711_v55, 0 }
 0x6f7   : > { %v623_v42 = vpop.permute.xlu0 %622 }
 0x6f8   : > { %v632_v43 = vand.u32 %v623_v42, %v1318_v51 }
 0x6f9   : > { %v699_v57 = vpop.permute.xlu1 %698 }
 0x6fa   : > { %1114 = vmatprep.subr.bf16.mxu1 %v632_v43  ;;  %v1222_v46 = vpop.eup %1221 }
 0x6fb   : > { %1115 = vmatpush3.bf16.msra.mxu1 %v632_v43  ;;  %v1224_v47 = vpop.eup %1223  ;;  %v617_v35 = vmul.f32 %v1222_v46, %v1218_v25  ;;  %v697_v54 = vpop.permute.xlu0 %696 }
 0x6fc   : > { %1142 = vmatprep.subr.msk.bf16.mxu1 %vm145_vm0, %v709_v45  ;;  %v616_v50 = vmul.f32 %v1224_v47, %v1216_v22 }
 0x6fd   : > { %v619_v53 = vpack.c.bf16 %v617_v35, %v617_v35 }
 0x6fe   : > { %v1226_v48 = vpop.eup %1225 }
 0x6ff   : > { %v615_v49 = vmul.f32 %v1226_v48, %v1220_v23 }
 0x701   : > { %v618_v44 = vpack.c.bf16 %v616_v50, %v615_v49 }
 0x703   : > { %1116 = vmatprep.mubr.msk.bf16.mxu1 %vm206_vm2, %v618_v44 }
 0x704   : > { %1117 = vmatmul.mubr.msk.bf16.vlgmr.msra.gmra.mrb[8].mxu1 %vm206_vm2, %v619_v53 }
 0x705   : > { %1121 = vmatpush3.bf16.xpose.msra.mxu1 %v719_v52  ;;  %1124 = vmatprep.mubr.msk.bf16.mxu1 %vm145_vm0, %v697_v54 }
 0x706   : > { %1143 = vmatprep.subr.msk.bf16.mxu1 %vm145_vm0, %v711_v55 }
 0x70d   : > { %1123 = vmatpush3.bf16.xpose.msra.mxu1 %v722_v56 }
 0x714   : > { %1125 = vmatmul.mubr.msk.bf16.vlgmr.msra.gmra.mrb[12].mxu1 %vm145_vm0, %v699_v57 }
 0x7d7   : > { %v1118_v58 = vpop.f32.mrb[8].mxu1 }
 0x7d8   : > { %v668_v59 = vpop.f32.mrb[9].mxu1 }
 0x7d9   : > { %v1173_v60 = vpack.i.bf16 %v668_v59, %v1118_v58  ;;  %v1119_v0 = vpop.f32.mrb[10].mxu1 }
 0x7da   : > { %v671_v2 = vpop.f32.mrb[11].mxu1 }
 0x7e7   : > { %v1126_v3 = vpop.f32.mrb[12].mxu1 }
 0x7e8   : > { %v758_v6 = vpop.f32.mrb[13].mxu1  ;;  %v778_v12 = vsel %vm213_vm1, %v1126_v3, -inf }
 0x7e9   : > { %v1127_v8 = vpop.f32.mrb[14].mxu1  ;;  %v772_v9 = vsel %vm206_vm2, %v758_v6, -inf }
 0x7ea   : > { %773 = vmax.xlane.f32.xlu0 %v772_v9  ;;  %v761_v10 = vpop.f32.mrb[15].mxu1 }
 0x7eb   : > { %v775_v11 = vsel %vm206_vm2, %v761_v10, -inf }
 0x7ec   : > { %776 = vmax.xlane.f32.xlu1 %v775_v11 }
 0x7ee   : > { %779 = vmax.xlane.f32.xlu0 %v778_v12 }
 0x877   : > { %v774_v13 = vpop.xlane.xlu0 %773 }
 0x878   : > { %v781_v15 = vsub.f32 %v758_v6, %v774_v13 }
 0x879   : > { %v777_v14 = vpop.xlane.xlu1 %776 }
 0x87a   : > { %v782_v16 = vsub.f32 %v761_v10, %v777_v14  ;;  %v784_v20 = vmul.f32 1.442695, %v781_v15 }
 0x87b   : > { %v780_v17 = vpop.xlane.xlu0 %779 }
 0x87c   : > { %v786_v18 = vmul.f32 1.442695, %v782_v16  ;;  %v783_v19 = vsub.f32 %v1126_v3, %v780_v17 }
 0x87e   : > { %1227 = vpow2.f32 %v786_v18  ;;  %v788_v21 = vmul.f32 1.442695, %v783_v19 }
 0x880   : > { %1229 = vpow2.f32 %v788_v21 }
 0x881   : > { %1231 = vpow2.f32 %v784_v20 }
 0x888   : > { %v1228_v22 = vpop.eup %1227 }
 0x889   : > { %v793_v24 = vsel %vm206_vm2, %v1228_v22, 0.0 }
 0x88a   : > { %v1230_v25 = vpop.eup %1229  ;;  %794 = vadd.xlane.f32.xlu1 %v793_v24 }
 0x88b   : > { %v796_v26 = vsel %vm213_vm1, %v1230_v25, 0.0  ;;  %v1232_v23 = vpop.eup %1231 }
 0x88c   : > { %797 = vadd.xlane.f32.xlu0 %v796_v26  ;;  %v790_v27 = vsel %vm206_vm2, %v1232_v23, 0.0 }
 0x890   : > { %791 = vadd.xlane.f32.xlu0 %v790_v27 }
 0x89b   : > { %807 = vrot.lane.b32.xlu1 %v1377_v30, %s1258_s22 }
 0x89f   : > { %1169 = vrot.lane.b32.xlu1 %v1168_v63, %s1259_s23 }
 0x8a3   : > { %874 = vrot.lane.b32.xlu1 %v1366_v1, %s1259_s23 }
 0x8a6   : > { %809 = vrot.lane.b32.xlu0 %v1381_v32, %s1258_s22 }
 0x8a7   : > { %886 = vrot.lane.b32.xlu1 %v671_v2, %s1260_s24 }
 0x8aa   : > { %1174 = vrot.lane.b32.xlu0 %v1173_v60, %s1260_s24  ;;  %v935_v60 = vld [vmem:[%s116_s28 + $0x8] sm:$0x1] }
 0x917   : > { %v795_v28 = vpop.xlane.xlu1 %794 }
 0x919   : > { %v798_v29 = vpop.xlane.xlu0 %797 }
 0x91a   : > { %1233 = vrcp.f32 %v798_v29 }
 0x91b   : > { %v808_v31 = vpop.permute.xlu1 %807  ;;  %1235 = vrcp.f32 %v795_v28 }
 0x91c   : > { %1128 = vmatprep.subr.bf16.mxu0 %v808_v31 }
 0x91d   : > { %v792_v33 = vpop.xlane.xlu0 %791  ;;  %1129 = vmatpush3.bf16.msra.mxu0 %v808_v31 }
 0x91e   : > { %1237 = vrcp.f32 %v792_v33 }
 0x921   : > { %v810_v30 = vpop.permute.xlu0 %809 }
 0x922   : > { %v819_v61 = vand.u32 %v810_v30, %v1318_v51  ;;  %v1170_v51 = vpop.permute.xlu1 %1169 }
 0x923   : > { %v1172_v46 = vunpack.i.h.bf16 %v1170_v51  ;;  %v1171_v48 = vunpack.i.l.bf16 %v1170_v51 }
 0x924   : > { %1130 = vmatprep.subr.bf16.mxu0 %v819_v61  ;;  %v1234_v62 = vpop.eup %1233 }
 0x925   : > { %1131 = vmatpush3.bf16.msra.mxu0 %v819_v61  ;;  %v1236_v63 = vpop.eup %1235  ;;  %v804_v32 = vmul.f32 %v1234_v62, %v1230_v25  ;;  %v1175_v47 = vpop.permute.xlu0 %1174  ;;  %v905_v44 = vsel %vm145_vm0, %v1331_v5, %v1172_v46  ;;  %v907_v53 = vsel %vm145_vm0, %v1329_v4, %v1171_v48 }
 0x926   : > { %v803_v36 = vmul.f32 %v1236_v63, %v1228_v22  ;;  %v875_v45 = vpop.permute.xlu1 %874  ;;  %v1177_v49 = vunpack.i.h.bf16 %v1175_v47  ;;  %v1176_v50 = vunpack.i.l.bf16 %v1175_v47 }
 0x927   : > { %v806_v38 = vpack.c.bf16 %v804_v32, %v804_v32  ;;  %v906_v52 = vsel %vm145_vm0, %v1333_v7, %v875_v45 }
 0x928   : > { %v1238_v1 = vpop.eup %1237  ;;  %v909_v7 = vsel %vm908_vm4, %v905_v44, %v1177_v49  ;;  %v911_v4 = vsel %vm908_vm4, %v907_v53, %v1176_v50 }
 0x929   : > { %v802_v34 = vmul.f32 %v1238_v1, %v1232_v23 }
 0x92a   : > { %v887_v35 = vpop.permute.xlu1 %886 }
 0x92b   : > { %v805_v37 = vpack.c.bf16 %v803_v36, %v802_v34  ;;  %v910_v54 = vsel %vm908_vm4, %v906_v52, %v887_v35 }
 0x92d   : > { %1132 = vmatprep.mubr.msk.bf16.mxu0 %vm206_vm2, %v805_v37 }
 0x92e   : > { %1133 = vmatmul.mubr.msk.bf16.vlgmr.msra.gmra.mrb[12].mxu0 %vm206_vm2, %v806_v38 }
 0xa01   : > { %v1134_v39 = vpop.f32.mrb[12].mxu0 }
 0xa02   : > { %v855_v40 = vpop.f32.mrb[13].mxu0 }
 0xa03   : > { %v1178_v41 = vpack.i.bf16 %v855_v40, %v1134_v39  ;;  %v1135_v42 = vpop.f32.mrb[14].mxu0 }
 0xa04   : > { %v858_v43 = vpop.f32.mrb[15].mxu0 }
 0xa05   : > { %1179 = vrot.lane.b32.xlu0 %v1178_v41, %s1261_s25  ;;  %898 = vrot.lane.b32.xlu1 %v858_v43, %s1261_s25 }
 0xa77   : > { %v1180_v55 = vpop.permute.xlu0 %1179  ;;  %v899_v56 = vpop.permute.xlu1 %898 }
 0xa78   : > { %v1182_v57 = vunpack.i.h.bf16 %v1180_v55  ;;  %v1181_v58 = vunpack.i.l.bf16 %v1180_v55  ;;  %v914_v5 = vsel %vm912_vm5, %v910_v54, %v899_v56 }
 0xa79   : > { %v1038_v59 = vpack.c.bf16 %v914_v5, %v914_v5 }
 0xa7a   : > { %v913_v0 = vsel %vm912_vm5, %v909_v7, %v1182_v57  ;;  %v915_v2 = vsel %vm912_vm5, %v911_v4, %v1181_v58 }
 0xa7b   : > { %v1037_v3 = vpack.c.bf16 %v913_v0, %v913_v0  ;;  %v1039_v6 = vpack.c.bf16 %v915_v2, %v915_v2  ;;  %931 = vst.msk [vmem:[%s116_s28 + $0x4] sm:$0xf] %vm929_vm8, %v1038_v59 }
 0xa7d   : > { %930 = vst.msk [vmem:[%s116_s28] sm:$0xf] %vm929_vm8, %v1037_v3  ;;  %v936_v8 = vsel %vm934_vm9, %v1039_v6, %v935_v60 }
 0xa7e   : > { %937 = vst [vmem:[%s116_s28 + $0x8] sm:$0x1] %v936_v8 }
 0xa7f PF: > { %s11_s6 = sadd.s32 1, %s1245_s6  }
 0xa80   : > { %p8_p4 = scmp.ge.s32.totalorder %s11_s6, 4  }
 0xa82   :  { %10 = sbr.rel (!%p8_p4) target bundleno = 1 (0x1), region = 54 }

// kernel: vit_forward.22
= control target key start
LH: loop header
LB: loop body
LE: loop exit
PB: predicated region body
PF: predicated region fallthrough
CT: control target
= control target key end

     0   :  { %v386_v0 = vmov 0.0   ;;  %vm387_vm0 = vmmov 0   ;;  %s456_s1 = inlined_call_operand.vmem [shape: bf16[128,128], index: 1, kind: input, shape index: {}]   ;;  %s457_s0 = inlined_call_operand.vmem [shape: bf16[40,128], index: 0, kind: input, shape index: {}]   ;;  %s458_s2 = inlined_call_operand.vmem [shape: f32[1,128], index: 2, kind: input, shape index: {}]   ;;  %s459_s3 = inlined_call_operand.vmem [shape: bf16[40,128], index: 3, kind: output, shape index: {}]  }
   0x1   :  { %319 = vmatprep.subr.bf16.mxu0 %v386_v0  ;;  %347 = vmatprep.subr.bf16.mxu1 %v386_v0  ;;  %v365_v1 = vld [vmem:[%s456_s1] sm:$0xff]   ;;  %v366_v2 = vld [vmem:[%s456_s1 + $0x8] sm:$0xff]   ;;  %v367_v3 = vld [vmem:[%s456_s1 + $0x10] sm:$0xff]  }
   0x2   :  { %335 = vmatprep.mubr.msk.bf16.mxu0 %vm387_vm0, %v386_v0  ;;  %339 = vmatprep.mubr.msk.bf16.mxu1 %vm387_vm0, %v386_v0  ;;  %v368_v4 = vld [vmem:[%s456_s1 + $0x18] sm:$0xff]   ;;  %v369_v5 = vld [vmem:[%s456_s1 + $0x20] sm:$0xff]   ;;  %v370_v6 = vld [vmem:[%s456_s1 + $0x28] sm:$0xff]  }
   0x3   :  { %320 = vmatpush3.bf16.msra.mxu0 %v365_v1  ;;  %355 = vmatpush3.bf16.msra.mxu1 %v365_v1  ;;  %v371_v7 = vld [vmem:[%s456_s1 + $0x30] sm:$0xff]   ;;  %v372_v8 = vld [vmem:[%s456_s1 + $0x38] sm:$0xff]   ;;  %v373_v9 = vld [vmem:[%s457_s0] sm:$0xff]  }
   0x4   :  { %321 = vmatprep.subr.bf16.mxu0 %v386_v0  ;;  %348 = vmatprep.subr.bf16.mxu1 %v386_v0  ;;  %v374_v10 = vld [vmem:[%s457_s0 + $0x8] sm:$0xff]   ;;  %v375_v11 = vld [vmem:[%s457_s0 + $0x10] ss:$0 sps:$4 sm:$0xff]   ;;  %v286_v12 = vld [vmem:[%s458_s2] ss:$0 sm:$0xff] }
   0x7   :  { %322 = vmatpush3.bf16.msra.mxu0 %v366_v2  ;;  %356 = vmatpush3.bf16.msra.mxu1 %v366_v2 }
   0x8   :  { %323 = vmatprep.subr.bf16.mxu0 %v386_v0  ;;  %349 = vmatprep.subr.bf16.mxu1 %v386_v0 }
   0xb   :  { %324 = vmatpush3.bf16.msra.mxu0 %v367_v3  ;;  %357 = vmatpush3.bf16.msra.mxu1 %v367_v3 }
   0xc   :  { %325 = vmatprep.subr.bf16.mxu0 %v386_v0  ;;  %350 = vmatprep.subr.bf16.mxu1 %v386_v0 }
   0xf   :  { %326 = vmatpush3.bf16.msra.mxu0 %v368_v4  ;;  %358 = vmatpush3.bf16.msra.mxu1 %v368_v4 }
  0x10   :  { %327 = vmatprep.subr.bf16.mxu0 %v386_v0  ;;  %351 = vmatprep.subr.bf16.mxu1 %v386_v0 }
  0x13   :  { %328 = vmatpush3.bf16.msra.mxu0 %v369_v5  ;;  %359 = vmatpush3.bf16.msra.mxu1 %v369_v5 }
  0x14   :  { %329 = vmatprep.subr.bf16.mxu0 %v386_v0  ;;  %352 = vmatprep.subr.bf16.mxu1 %v386_v0 }
  0x17   :  { %330 = vmatpush3.bf16.msra.mxu0 %v370_v6  ;;  %360 = vmatpush3.bf16.msra.mxu1 %v370_v6 }
  0x18   :  { %331 = vmatprep.subr.bf16.mxu0 %v386_v0  ;;  %353 = vmatprep.subr.bf16.mxu1 %v386_v0 }
  0x1b   :  { %332 = vmatpush3.bf16.msra.mxu0 %v371_v7  ;;  %361 = vmatpush3.bf16.msra.mxu1 %v371_v7 }
  0x1c   :  { %333 = vmatprep.subr.bf16.mxu0 %v386_v0  ;;  %354 = vmatprep.subr.bf16.mxu1 %v386_v0 }
  0x1f   :  { %334 = vmatpush3.bf16.msra.mxu0 %v372_v8  ;;  %362 = vmatpush3.bf16.msra.mxu1 %v372_v8 }
  0x22   :  { %336 = vmatmul.mubr.bf16.vlgmr.msra.gmra.mrb[0].mxu0 %v373_v9  ;;  %340 = vmatmul.mubr.bf16.vlgmr.msra.gmra.mrb[0].mxu1 %v374_v10 }
  0x23   :  { %343 = vmatprep.mubr.msk.bf16.mxu1 %vm387_vm0, %v386_v0 }
  0x2a   :  { %344 = vmatmul.mubr.bf16.gmra.mrb[4].mxu1 %v375_v11 }
  0xf5   :  { %v148_v13 = vpop.f32.mrb[0].mxu0  ;;  %v156_v14 = vpop.f32.mrb[0].mxu1 }
  0xf6   :  { %v195_v15 = vadd.f32 %v286_v12, %v148_v13  ;;  %v197_v16 = vadd.f32 %v286_v12, %v156_v14  ;;  %v337_v17 = vpop.f32.mrb[1].mxu0  ;;  %v341_v18 = vpop.f32.mrb[1].mxu1 }
  0xf7   :  { %v151_v19 = vpop.f32.mrb[2].mxu0  ;;  %v159_v20 = vpop.f32.mrb[2].mxu1 }
  0xf8   :  { %v200_v21 = vmul.f32 %v195_v15, %v195_v15  ;;  %v202_v22 = vmul.f32 %v197_v16, %v197_v16  ;;  %v196_v23 = vadd.f32 %v286_v12, %v151_v19  ;;  %v198_v24 = vadd.f32 %v286_v12, %v159_v20  ;;  %v342_v25 = vpop.f32.mrb[3].mxu1  ;;  %v338_v26 = vpop.f32.mrb[3].mxu0 }
  0xfa   :  { %v205_v27 = vmul.f32 %v200_v21, %v195_v15  ;;  %v207_v28 = vmul.f32 %v202_v22, %v197_v16  ;;  %v201_v29 = vmul.f32 %v196_v23, %v196_v23  ;;  %v203_v30 = vmul.f32 %v198_v24, %v198_v24 }
  0xfc   :  { %v210_v31 = vmul.f32 0.044715, %v205_v27  ;;  %v212_v32 = vmul.f32 0.044715, %v207_v28  ;;  %v206_v33 = vmul.f32 %v201_v29, %v196_v23  ;;  %v208_v34 = vmul.f32 %v203_v30, %v198_v24 }
  0xfd   :  { %v164_v35 = vpop.f32.mrb[4].mxu1 }
  0xfe   :  { %v215_v36 = vadd.f32 %v210_v31, %v195_v15  ;;  %v217_v37 = vadd.f32 %v212_v32, %v197_v16  ;;  %v211_v38 = vmul.f32 0.044715, %v206_v33  ;;  %v213_v39 = vmul.f32 0.044715, %v208_v34  ;;  %v345_v40 = vpop.f32.mrb[5].mxu1 }
  0xff   :  { %v199_v41 = vadd.f32 %v286_v12, %v164_v35  ;;  %v167_v42 = vpop.f32.mrb[6].mxu1 }
 0x100   :  { %v220_v43 = vmul.f32 0.7978846, %v215_v36  ;;  %v222_v44 = vmul.f32 0.7978846, %v217_v37  ;;  %v216_v45 = vadd.f32 %v211_v38, %v196_v23  ;;  %v218_v46 = vadd.f32 %v213_v39, %v198_v24  ;;  %v346_v47 = vpop.f32.mrb[7].mxu1 }
 0x101   :  { %v204_v48 = vmul.f32 %v199_v41, %v199_v41 }
 0x102   :  { %376 = vtanh.f32 %v220_v43  ;;  %v221_v49 = vmul.f32 0.7978846, %v216_v45  ;;  %v223_v50 = vmul.f32 0.7978846, %v218_v46 }
 0x103   :  { %378 = vtanh.f32 %v222_v44  ;;  %v209_v51 = vmul.f32 %v204_v48, %v199_v41 }
 0x104   :  { %380 = vtanh.f32 %v221_v49 }
 0x105   :  { %382 = vtanh.f32 %v223_v50  ;;  %v214_v52 = vmul.f32 0.044715, %v209_v51 }
 0x107   :  { %v219_v53 = vadd.f32 %v214_v52, %v199_v41 }
 0x109   :  { %v224_v54 = vmul.f32 0.7978846, %v219_v53 }
 0x10b   :  { %384 = vtanh.f32 %v224_v54 }
 0x10c   :  { %v377_v55 = vpop.eup %376 }
 0x10d   :  { %v379_v56 = vpop.eup %378  ;;  %v230_v57 = vadd.f32 1.0, %v377_v55 }
 0x10e   :  { %v381_v58 = vpop.eup %380  ;;  %v232_v59 = vadd.f32 1.0, %v379_v56 }
 0x10f   :  { %v383_v60 = vpop.eup %382  ;;  %v235_v61 = vmul.f32 0.5, %v230_v57  ;;  %v231_v62 = vadd.f32 1.0, %v381_v58 }
 0x110   :  { %v237_v63 = vmul.f32 0.5, %v232_v59  ;;  %v233_v0 = vadd.f32 1.0, %v383_v60 }
 0x111   :  { %v236_v1 = vmul.f32 0.5, %v231_v62  ;;  %v240_v3 = vmul.f32 %v235_v61, %v195_v15 }
 0x112   :  { %v238_v2 = vmul.f32 0.5, %v233_v0  ;;  %v242_v5 = vmul.f32 %v237_v63, %v197_v16 }
 0x113   :  { %v241_v4 = vmul.f32 %v236_v1, %v196_v23 }
 0x114   :  { %v243_v6 = vmul.f32 %v238_v2, %v198_v24 }
 0x115   :  { %v385_v7 = vpop.eup %384  ;;  %v300_v8 = vpack.c.bf16 %v241_v4, %v240_v3 }
 0x116   :  { %v305_v9 = vpack.c.bf16 %v243_v6, %v242_v5  ;;  %v234_v10 = vadd.f32 1.0, %v385_v7 }
 0x117   :  { %301 = vst [vmem:[%s459_s3] sm:$0xff] %v300_v8  }
 0x118   :  { %307 = vst [vmem:[%s459_s3 + $0x8] sm:$0xff] %v305_v9   ;;  %v239_v11 = vmul.f32 0.5, %v234_v10 }
 0x11a   :  { %v244_v12 = vmul.f32 %v239_v11, %v199_v41 }
 0x11c   :  { %v296_v13 = vpack.c.bf16 %v244_v12, %v244_v12 }
 0x11e   :  { %270 = vst [vmem:[%s459_s3 + $0x10] sm:$0xf] %v296_v13 }

// kernel: vit_forward.31
= control target key start
LH: loop header
LB: loop body
LE: loop exit
PB: predicated region body
PF: predicated region fallthrough
CT: control target
= control target key end

     0   :  { %v193_v0 = vmov 0.0   ;;  %vm194_vm0 = vmmov 0   ;;  %s248_s1 = inlined_call_operand.vmem [shape: bf16[128,128], index: 1, kind: input, shape index: {}]   ;;  %s249_s0 = inlined_call_operand.vmem [shape: bf16[8,128], index: 0, kind: input, shape index: {}]   ;;  %s250_s2 = inlined_call_operand.vmem [shape: f32[1,128], index: 2, kind: input, shape index: {}]   ;;  %s251_s3 = inlined_call_operand.vmem [shape: f32[8,128], index: 3, kind: output, shape index: {}]  }
   0x1   :  { %163 = vmatprep.subr.bf16.mxu0 %v193_v0  ;;  %v185_v1 = vld [vmem:[%s248_s1] sm:$0xff]   ;;  %179 = vmatprep.mubr.msk.bf16.mxu0 %vm194_vm0, %v193_v0  ;;  %v186_v2 = vld [vmem:[%s248_s1 + $0x8] sm:$0xff]   ;;  %v187_v3 = vld [vmem:[%s248_s1 + $0x10] sm:$0xff]  }
   0x2   :  { %164 = vmatpush3.bf16.msra.mxu0 %v185_v1  ;;  %v188_v4 = vld [vmem:[%s248_s1 + $0x18] sm:$0xff]   ;;  %v189_v5 = vld [vmem:[%s248_s1 + $0x20] sm:$0xff]   ;;  %v190_v6 = vld [vmem:[%s248_s1 + $0x28] sm:$0xff]  }
   0x3   :  { %165 = vmatprep.subr.bf16.mxu0 %v193_v0  ;;  %v191_v7 = vld [vmem:[%s248_s1 + $0x30] sm:$0xff]   ;;  %v192_v8 = vld [vmem:[%s248_s1 + $0x38] sm:$0xff]   ;;  %v21_v9 = vld [vmem:[%s249_s0] sm:$0xf] }
   0x4   :  { %v153_v10 = vld [vmem:[%s250_s2] ss:$0 sm:$0xff] }
   0x6   :  { %166 = vmatpush3.bf16.msra.mxu0 %v186_v2 }
   0x7   :  { %167 = vmatprep.subr.bf16.mxu0 %v193_v0 }
   0xa   :  { %168 = vmatpush3.bf16.msra.mxu0 %v187_v3 }
   0xb   :  { %169 = vmatprep.subr.bf16.mxu0 %v193_v0 }
   0xe   :  { %170 = vmatpush3.bf16.msra.mxu0 %v188_v4 }
   0xf   :  { %171 = vmatprep.subr.bf16.mxu0 %v193_v0 }
  0x12   :  { %172 = vmatpush3.bf16.msra.mxu0 %v189_v5 }
  0x13   :  { %173 = vmatprep.subr.bf16.mxu0 %v193_v0 }
  0x16   :  { %174 = vmatpush3.bf16.msra.mxu0 %v190_v6 }
  0x17   :  { %175 = vmatprep.subr.bf16.mxu0 %v193_v0 }
  0x1a   :  { %176 = vmatpush3.bf16.msra.mxu0 %v191_v7 }
  0x1b   :  { %177 = vmatprep.subr.bf16.mxu0 %v193_v0 }
  0x1e   :  { %178 = vmatpush3.bf16.msra.mxu0 %v192_v8 }
  0x21   :  { %180 = vmatmul.mubr.bf16.vlgmr.msra.gmra.mrb[0].mxu0 %v21_v9 }
  0xf4   :  { %v120_v11 = vpop.f32.mrb[0].mxu0 }
  0xf5   :  { %v139_v12 = vadd.f32 %v153_v10, %v120_v11  ;;  %v181_v13 = vpop.f32.mrb[1].mxu0 }
  0xf6   :  { %v123_v14 = vpop.f32.mrb[2].mxu0 }
  0xf7   :  { %140 = vst [vmem:[%s251_s3] sm:$0xff] %v139_v12  ;;  %v182_v15 = vpop.f32.mrb[3].mxu0 }

// kernel: vit_forward.20
= control target key start
LH: loop header
LB: loop body
LE: loop exit
PB: predicated region body
PF: predicated region fallthrough
CT: control target
= control target key end

     0   :  { %v358_v0 = vmov 0.0   ;;  %vm359_vm0 = vmmov 0   ;;  %s442_s1 = inlined_call_operand.vmem [shape: bf16[128,128], index: 1, kind: input, shape index: {}]   ;;  %s443_s0 = inlined_call_operand.vmem [shape: bf16[40,128], index: 0, kind: input, shape index: {}]   ;;  %s444_s3 = inlined_call_operand.vmem [shape: bf16[40,128], index: 3, kind: input, shape index: {}]   ;;  %s445_s2 = inlined_call_operand.vmem [shape: f32[1,128], index: 2, kind: input, shape index: {}]   ;;  %s446_s4 = inlined_call_operand.vmem [shape: bf16[40,128], index: 4, kind: output, shape index: {}]  }
   0x1   :  { %329 = vmatprep.subr.bf16.mxu1 %v358_v0  ;;  %v347_v1 = vld [vmem:[%s442_s1] sm:$0xff]   ;;  %301 = vmatprep.subr.bf16.mxu0 %v358_v0  ;;  %v348_v2 = vld [vmem:[%s442_s1 + $0x8] sm:$0xff]   ;;  %v349_v3 = vld [vmem:[%s442_s1 + $0x10] sm:$0xff]  }
   0x2   :  { %321 = vmatprep.mubr.msk.bf16.mxu1 %vm359_vm0, %v358_v0  ;;  %317 = vmatprep.mubr.msk.bf16.mxu0 %vm359_vm0, %v358_v0  ;;  %v350_v4 = vld [vmem:[%s442_s1 + $0x18] sm:$0xff]   ;;  %v351_v5 = vld [vmem:[%s442_s1 + $0x20] sm:$0xff]   ;;  %v352_v6 = vld [vmem:[%s442_s1 + $0x28] sm:$0xff]  }
   0x3   :  { %337 = vmatpush3.bf16.msra.mxu1 %v347_v1  ;;  %302 = vmatpush3.bf16.msra.mxu0 %v347_v1  ;;  %v353_v7 = vld [vmem:[%s442_s1 + $0x30] sm:$0xff]   ;;  %v354_v8 = vld [vmem:[%s442_s1 + $0x38] sm:$0xff]   ;;  %v355_v9 = vld [vmem:[%s443_s0 + $0x8] sm:$0xff]  }
   0x4   :  { %330 = vmatprep.subr.bf16.mxu1 %v358_v0  ;;  %303 = vmatprep.subr.bf16.mxu0 %v358_v0  ;;  %v356_v10 = vld [vmem:[%s443_s0] sm:$0xff]   ;;  %v357_v11 = vld [vmem:[%s443_s0 + $0x10] ss:$0 sps:$4 sm:$0xff]   ;;  %v288_v13 = vld [vmem:[%s444_s3 + $0x8] sm:$0xff]  }
   0x5   :  { %v271_v12 = vld [vmem:[%s444_s3] sm:$0xff]   ;;  %v276_v17 = vunpack.c.l.bf16 %v288_v13  ;;  %v277_v21 = vunpack.c.h.bf16 %v288_v13  ;;  %v207_v32 = vld [vmem:[%s444_s3 + $0x10] sm:$0xf] }
   0x6   :  { %v259_v14 = vld [vmem:[%s445_s2] ss:$0 sm:$0xff]  ;;  %v272_v15 = vunpack.c.l.bf16 %v271_v12  ;;  %v273_v24 = vunpack.c.h.bf16 %v271_v12  ;;  %v212_v38 = vunpack.c.l.bf16 %v207_v32 }
   0x7   :  { %338 = vmatpush3.bf16.msra.mxu1 %v348_v2  ;;  %304 = vmatpush3.bf16.msra.mxu0 %v348_v2 }
   0x8   :  { %331 = vmatprep.subr.bf16.mxu1 %v358_v0  ;;  %305 = vmatprep.subr.bf16.mxu0 %v358_v0 }
   0xb   :  { %339 = vmatpush3.bf16.msra.mxu1 %v349_v3  ;;  %306 = vmatpush3.bf16.msra.mxu0 %v349_v3 }
   0xc   :  { %332 = vmatprep.subr.bf16.mxu1 %v358_v0  ;;  %307 = vmatprep.subr.bf16.mxu0 %v358_v0 }
   0xf   :  { %340 = vmatpush3.bf16.msra.mxu1 %v350_v4  ;;  %308 = vmatpush3.bf16.msra.mxu0 %v350_v4 }
  0x10   :  { %333 = vmatprep.subr.bf16.mxu1 %v358_v0  ;;  %309 = vmatprep.subr.bf16.mxu0 %v358_v0 }
  0x13   :  { %341 = vmatpush3.bf16.msra.mxu1 %v351_v5  ;;  %310 = vmatpush3.bf16.msra.mxu0 %v351_v5 }
  0x14   :  { %334 = vmatprep.subr.bf16.mxu1 %v358_v0  ;;  %311 = vmatprep.subr.bf16.mxu0 %v358_v0 }
  0x17   :  { %342 = vmatpush3.bf16.msra.mxu1 %v352_v6  ;;  %312 = vmatpush3.bf16.msra.mxu0 %v352_v6 }
  0x18   :  { %335 = vmatprep.subr.bf16.mxu1 %v358_v0  ;;  %313 = vmatprep.subr.bf16.mxu0 %v358_v0 }
  0x1b   :  { %343 = vmatpush3.bf16.msra.mxu1 %v353_v7  ;;  %314 = vmatpush3.bf16.msra.mxu0 %v353_v7 }
  0x1c   :  { %336 = vmatprep.subr.bf16.mxu1 %v358_v0  ;;  %315 = vmatprep.subr.bf16.mxu0 %v358_v0 }
  0x1f   :  { %344 = vmatpush3.bf16.msra.mxu1 %v354_v8  ;;  %316 = vmatpush3.bf16.msra.mxu0 %v354_v8 }
  0x22   :  { %322 = vmatmul.mubr.bf16.vlgmr.msra.gmra.mrb[0].mxu1 %v355_v9  ;;  %318 = vmatmul.mubr.bf16.vlgmr.msra.gmra.mrb[0].mxu0 %v356_v10 }
  0x23   :  { %325 = vmatprep.mubr.msk.bf16.mxu1 %vm359_vm0, %v358_v0 }
  0x2a   :  { %326 = vmatmul.mubr.bf16.gmra.mrb[4].mxu1 %v357_v11 }
  0xf5   :  { %v159_v16 = vpop.f32.mrb[0].mxu1  ;;  %v151_v18 = vpop.f32.mrb[0].mxu0 }
  0xf6   :  { %v200_v19 = vadd.f32 %v259_v14, %v159_v16  ;;  %v323_v20 = vpop.f32.mrb[1].mxu1  ;;  %v198_v22 = vadd.f32 %v259_v14, %v151_v18  ;;  %v319_v23 = vpop.f32.mrb[1].mxu0 }
  0xf7   :  { %v162_v25 = vpop.f32.mrb[2].mxu1  ;;  %v154_v26 = vpop.f32.mrb[2].mxu0 }
  0xf8   :  { %v201_v27 = vadd.f32 %v259_v14, %v162_v25  ;;  %v213_v28 = vadd.f32 %v272_v15, %v198_v22  ;;  %v324_v29 = vpop.f32.mrb[3].mxu1  ;;  %v199_v30 = vadd.f32 %v259_v14, %v154_v26  ;;  %v320_v31 = vpop.f32.mrb[3].mxu0  ;;  %v215_v33 = vadd.f32 %v276_v17, %v200_v19 }
  0xfa   :  { %v216_v34 = vadd.f32 %v277_v21, %v201_v27  ;;  %v214_v35 = vadd.f32 %v273_v24, %v199_v30 }
  0xfc   :  { %v286_v36 = vpack.c.bf16 %v216_v34, %v215_v33  ;;  %v281_v37 = vpack.c.bf16 %v214_v35, %v213_v28 }
  0xfd   :  { %v167_v39 = vpop.f32.mrb[4].mxu1 }
  0xfe   :  { %289 = vst [vmem:[%s446_s4 + $0x8] sm:$0xff] %v286_v36   ;;  %282 = vst [vmem:[%s446_s4] sm:$0xff] %v281_v37   ;;  %v202_v40 = vadd.f32 %v259_v14, %v167_v39  ;;  %v327_v41 = vpop.f32.mrb[5].mxu1 }
  0xff   :  { %v170_v42 = vpop.f32.mrb[6].mxu1 }
 0x100   :  { %v217_v43 = vadd.f32 %v212_v38, %v202_v40  ;;  %v328_v44 = vpop.f32.mrb[7].mxu1 }
 0x102   :  { %v269_v45 = vpack.c.bf16 %v217_v43, %v217_v43 }
 0x104   :  { %243 = vst [vmem:[%s446_s4 + $0x10] sm:$0xf] %v269_v45 }

</bundles_post_ra>
